<compile_context>
chip_gen: v5e
topology: v5e:2x2
jax: 0.10.0
libtpu: 0.0.40
codegen_flags: <defaults>
</compile_context>

<pallas_src>
import math
from functools import partial

import jax
import jax.numpy as jnp
from jax.experimental import pallas as pl
from jax.experimental.pallas import tpu as pltpu


def _encoder_stack_kernel(n_head,
                          x_ref,
                          wqkv_ref, bqkv_ref, wo_ref, bo_ref,
                          ln1g_ref, ln1b_ref,
                          w1_ref, b1_ref, w2_ref, b2_ref,
                          ln2g_ref, ln2b_ref,
                          o_ref, act_ref):
    """All L post-norm TransformerEncoderLayers (PyTorch semantics), one layer per grid step.

    x_ref    : (B, S, D) f32   original (PE-added) activation, read only at l == 0
    wqkv_ref : (1, D, 3D)      fused in_proj weight (x @ W layout)
    bqkv_ref : (1, 1, 3D)
    wo_ref   : (1, D, D), bo_ref: (1, 1, D)
    ln*      : (1, 1, D)
    w1_ref   : (1, D, FF) bf16, b1_ref: (1, 1, FF)
    w2_ref   : (1, FF, D) bf16, b2_ref: (1, 1, D)
    o_ref    : (B, S, D)       written once, at the last layer
    act_ref  : (B*S, D) VMEM   layer-resident activation carried across the grid
    """
    l = pl.program_id(0)
    B, S, D = x_ref.shape
    H = n_head
    hd = D // H
    scale = 1.0 / math.sqrt(hd)
    eps = 1e-5

    @pl.when(l == 0)
    def _():
        act_ref[...] = x_ref[...].reshape(B * S, D)

    x2 = act_ref[...]                                             # (B*S, D) f32

    # ---- fused QKV projection: one (B*S, D) x (D, 3D) MXU matmul ----
    qkv = jnp.dot(x2, wqkv_ref[0], preferred_element_type=jnp.float32) + bqkv_ref[0]

    # ---- causal mask built in-kernel (no DMA; finite negative -> no NaN hazard) ----
    row = jax.lax.broadcasted_iota(jnp.int32, (S, S), 0)
    col = jax.lax.broadcasted_iota(jnp.int32, (S, S), 1)
    neg = jnp.where(col <= row, 0.0, -1e30).astype(jnp.float32)   # (S, S) additive

    # ---- multi-head attention: batched-over-B einsums, small static head loop ----
    ctx_parts = []
    for h in range(H):
        qh = qkv[:, h * hd:(h + 1) * hd].reshape(B, S, hd)
        kh = qkv[:, D + h * hd:D + (h + 1) * hd].reshape(B, S, hd)
        vh = qkv[:, 2 * D + h * hd:2 * D + (h + 1) * hd].reshape(B, S, hd)
        s = jnp.einsum('bqe,bke->bqk', qh, kh,
                       preferred_element_type=jnp.float32) * scale + neg
        m = jnp.max(s, axis=-1, keepdims=True)
        p = jnp.exp(s - m)
        p = p * pl.reciprocal(jnp.sum(p, axis=-1, keepdims=True), approx=True)
        ch = jnp.einsum('bqk,bke->bqe', p, vh, preferred_element_type=jnp.float32)
        ctx_parts.append(ch.reshape(B * S, hd))
    ctx = jnp.concatenate(ctx_parts, axis=-1)                     # (B*S, D)

    # ---- fused output projection: one (B*S, D) x (D, D) matmul ----
    attn = jnp.dot(ctx, wo_ref[0], preferred_element_type=jnp.float32) + bo_ref[0]

    # ---- add & LayerNorm 1 ----
    y = x2 + attn
    mu = jnp.mean(y, axis=-1, keepdims=True)
    var = jnp.mean((y - mu) ** 2, axis=-1, keepdims=True)
    y = (y - mu) * jax.lax.rsqrt(var + eps) * ln1g_ref[0] + ln1b_ref[0]

    # ---- feed-forward (ReLU): bf16 weights, f32 accumulation ----
    h1 = jnp.dot(y.astype(jnp.bfloat16), w1_ref[0],
                 preferred_element_type=jnp.float32) + b1_ref[0]
    h1 = jnp.maximum(h1, 0.0)
    h2 = jnp.dot(h1.astype(jnp.bfloat16), w2_ref[0],
                 preferred_element_type=jnp.float32) + b2_ref[0]

    # ---- add & LayerNorm 2 ----
    z = y + h2
    mu2 = jnp.mean(z, axis=-1, keepdims=True)
    var2 = jnp.mean((z - mu2) ** 2, axis=-1, keepdims=True)
    z = (z - mu2) * jax.lax.rsqrt(var2 + eps) * ln2g_ref[0] + ln2b_ref[0]

    act_ref[...] = z                                              # carry to next layer

    @pl.when(l == pl.num_programs(0) - 1)
    def _():
        o_ref[...] = z.reshape(B, S, D)                           # single whole-array store


def encoder_stack(x, p, n_head):
    """x: (B, S, D) f32 -> (B, S, D) through all L encoder layers in one pallas_call."""
    B, S, D = x.shape
    L = p['wqkv'].shape[0]

    def layer_spec(arr):
        dims = arr.shape[1:]
        nd = len(dims)
        return pl.BlockSpec((1,) + dims, lambda l, _nd=nd: (l,) + (0,) * _nd)

    act_spec = pl.BlockSpec((B, S, D), lambda l: (0, 0, 0))
    names = ['wqkv', 'bqkv', 'wo', 'bo', 'ln1g', 'ln1b',
             'w1', 'b1', 'w2', 'b2', 'ln2g', 'ln2b']
    args = [p[n] for n in names]

    return pl.pallas_call(
        partial(_encoder_stack_kernel, n_head),
        out_shape=jax.ShapeDtypeStruct((B, S, D), jnp.float32),
        grid_spec=pltpu.PrefetchScalarGridSpec(
            num_scalar_prefetch=0,
            grid=(L,),
            in_specs=[act_spec] + [layer_spec(a) for a in args],
            out_specs=act_spec,
            scratch_shapes=[pltpu.VMEM((B * S, D), jnp.float32)]),
        compiler_params=pltpu.CompilerParams(
            dimension_semantics=("arbitrary",),
            vmem_limit_bytes=32 * 1024 * 1024),
    )(x, *args)


# ----------------------------- glue (plain JAX) -----------------------------

def positional_encoding(S, D):
    pos = jnp.arange(S, dtype=jnp.float32)[:, None]
    div = jnp.exp(jnp.arange(0, D, 2, dtype=jnp.float32) * (-math.log(10000.0) / D))
    pe = jnp.zeros((S, D), jnp.float32)
    pe = pe.at[:, 0::2].set(jnp.sin(pos * div))
    pe = pe.at[:, 1::2].set(jnp.cos(pos * div))
    return pe                                           # (S, D)


def init_layer_params(key, D, H, FF):
    ks = jax.random.split(key, 4)

    def w(k, shape, fan_in):
        return jax.random.normal(k, shape, jnp.float32) / jnp.sqrt(float(fan_in))

    return dict(
        wqkv=w(ks[0], (D, 3 * D), D),                       # fused in_proj (x @ W layout)
        bqkv=jnp.zeros((1, 3 * D), jnp.float32),
        wo=w(ks[1], (D, D), D),                             # out_proj
        bo=jnp.zeros((1, D), jnp.float32),
        ln1g=jnp.ones((1, D), jnp.float32), ln1b=jnp.zeros((1, D), jnp.float32),
        w1=w(ks[2], (D, FF), D).astype(jnp.bfloat16),       # FFN weights stored bf16
        b1=jnp.zeros((1, FF), jnp.float32),
        w2=w(ks[3], (FF, D), FF).astype(jnp.bfloat16),
        b2=jnp.zeros((1, D), jnp.float32),
        ln2g=jnp.ones((1, D), jnp.float32), ln2b=jnp.zeros((1, D), jnp.float32),
    )


def stack_layer_params(layer_params):
    """Stack a list of per-layer dicts along a new leading L axis."""
    return {k: jnp.stack([p[k] for p in layer_params]) for k in layer_params[0]}


def time_series_transformer(src, stacked_params, n_head, pooling='mean', cls_token=None):
    """src: (S, B, D) seq-first float32, exactly like the PyTorch module."""
    if pooling == 'first':
        _, B, D = src.shape
        cls = jnp.broadcast_to(cls_token, (1, B, D))
        src = jnp.concatenate([cls, src], axis=0)
    S, B, D = src.shape

    src = src + positional_encoding(S, D)[:, None, :]   # PositionalEncoding
    x = jnp.transpose(src, (1, 0, 2))                   # (B, S, D) for the kernel
    out = encoder_stack(x, stacked_params, n_head)      # all layers, one pallas_call

    if pooling == 'mean':
        out = jnp.mean(out, axis=1).squeeze()
    elif pooling == 'max':
        out = jnp.max(out, axis=1).squeeze()
    elif pooling == 'last':
        out = out[:, -1, :]
    elif pooling == 'first':
        out = out[:, 0, :]
    elif pooling == 'all':
        pass
    else:
        raise NotImplementedError('only transformer_pooling mean / all for now.')
    return out


if __name__ == "__main__":
    # config: feature_size=32, n_head=4, num_layers=2, transformer_pooling='mean'
    # FF = 2048 is the PyTorch nn.TransformerEncoderLayer default dim_feedforward.
    S, B, D, H, FF, L = 8, 2, 32, 4, 2048, 2
    key = jax.random.PRNGKey(0)
    k_src, k_par = jax.random.split(key)
    src = jax.random.normal(k_src, (S, B, D), jnp.float32)
    params = stack_layer_params(
        [init_layer_params(k, D, H, FF) for k in jax.random.split(k_par, L)])

    out = time_series_transformer(src, params, n_head=H, pooling='mean')
    out = jax.block_until_ready(out)
    assert out.shape == (B, D) and out.dtype == jnp.float32
    assert bool(jnp.all(jnp.isfinite(out)))
    print("KERNEL_OK")
</pallas_src>

<mosaic_0001>
module attributes {stable_mosaic.version = 11 : i64} {
  func.func @_encoder_stack_kernel(%arg0: i32, %arg1: memref<2x8x32xf32, #tpu.memory_space<vmem>>, %arg2: memref<1x32x96xf32, #tpu.memory_space<vmem>>, %arg3: memref<1x1x96xf32, #tpu.memory_space<vmem>>, %arg4: memref<1x32x32xf32, #tpu.memory_space<vmem>>, %arg5: memref<1x1x32xf32, #tpu.memory_space<vmem>>, %arg6: memref<1x1x32xf32, #tpu.memory_space<vmem>>, %arg7: memref<1x1x32xf32, #tpu.memory_space<vmem>>, %arg8: memref<1x32x2048xbf16, #tpu.memory_space<vmem>>, %arg9: memref<1x1x2048xf32, #tpu.memory_space<vmem>>, %arg10: memref<1x2048x32xbf16, #tpu.memory_space<vmem>>, %arg11: memref<1x1x32xf32, #tpu.memory_space<vmem>>, %arg12: memref<1x1x32xf32, #tpu.memory_space<vmem>>, %arg13: memref<1x1x32xf32, #tpu.memory_space<vmem>>, %arg14: memref<2x8x32xf32, #tpu.memory_space<vmem>>, %arg15: memref<16x32xf32, #tpu.memory_space<vmem>>) attributes {dimension_semantics = [#tpu.dimension_semantics<arbitrary>], iteration_bounds = array<i64: 2>, scalar_prefetch = 0 : i64, scratch_operands = 1 : i64, tpu.core_type = #tpu.core_type<tc>, window_params = [{pipeline_mode = #tpu.pipeline_mode<synchronous>, transform_indices = @transform_0, window_bounds = array<i64: 2, 8, 32>}, {transform_indices = @transform_1, window_bounds = array<i64: 1, 32, 96>}, {transform_indices = @transform_2, window_bounds = array<i64: 1, 1, 96>}, {transform_indices = @transform_3, window_bounds = array<i64: 1, 32, 32>}, {transform_indices = @transform_4, window_bounds = array<i64: 1, 1, 32>}, {transform_indices = @transform_5, window_bounds = array<i64: 1, 1, 32>}, {transform_indices = @transform_6, window_bounds = array<i64: 1, 1, 32>}, {transform_indices = @transform_7, window_bounds = array<i64: 1, 32, 2048>}, {transform_indices = @transform_8, window_bounds = array<i64: 1, 1, 2048>}, {transform_indices = @transform_9, window_bounds = array<i64: 1, 2048, 32>}, {transform_indices = @transform_10, window_bounds = array<i64: 1, 1, 32>}, {transform_indices = @transform_11, window_bounds = array<i64: 1, 1, 32>}, {transform_indices = @transform_12, window_bounds = array<i64: 1, 1, 32>}, {pipeline_mode = #tpu.pipeline_mode<synchronous>, transform_indices = @transform_13, window_bounds = array<i64: 2, 8, 32>}]} {
    %c0_i32 = arith.constant 0 : i32
    %0 = arith.cmpi eq, %arg0, %c0_i32 : i32
    %1 = arith.extui %0 : i1 to i32
    %c0_i32_0 = arith.constant 0 : i32
    %2 = arith.cmpi ne, %1, %c0_i32_0 : i32
    scf.if %2 {
      %c0_77 = arith.constant 0 : index
      %c0_78 = arith.constant 0 : index
      %c0_79 = arith.constant 0 : index
      %197 = vector.load %arg1[%c0_77, %c0_78, %c0_79] : memref<2x8x32xf32, #tpu.memory_space<vmem>>, vector<2x8x32xf32>
      %198 = vector.shape_cast %197 : vector<2x8x32xf32> to vector<16x32xf32>
      %c0_80 = arith.constant 0 : index
      %c0_81 = arith.constant 0 : index
      %199 = vector.load %arg15[%c0_80, %c0_81] : memref<16x32xf32, #tpu.memory_space<vmem>>, vector<16x32xf32>
      tpu.vector_store %arg15[%c0_80, %c0_81], %198 {strides = array<i32>} : memref<16x32xf32, #tpu.memory_space<vmem>>, vector<16x32xf32>,
    } else {
    }
    %c0 = arith.constant 0 : index
    %c0_1 = arith.constant 0 : index
    %3 = vector.load %arg15[%c0, %c0_1] : memref<16x32xf32, #tpu.memory_space<vmem>>, vector<16x32xf32>
    %c0_2 = arith.constant 0 : index
    %c0_3 = arith.constant 0 : index
    %c0_4 = arith.constant 0 : index
    %4 = vector.load %arg2[%c0_2, %c0_3, %c0_4] : memref<1x32x96xf32, #tpu.memory_space<vmem>>, vector<1x32x96xf32>
    %5 = vector.shape_cast %4 : vector<1x32x96xf32> to vector<32x96xf32>
    %cst = arith.constant dense<0.000000e+00> : vector<16x96xf32>
    %6 = tpu.matmul %3, %5, %cst {dimension_numbers = #tpu.dot_dimension_numbers<[1], [0], [0], [1], [0, 0, 1, 1], [], []>} : vector<16x32xf32>, vector<32x96xf32>, vector<16x96xf32> -> vector<16x96xf32>
    %c0_5 = arith.constant 0 : index
    %c0_6 = arith.constant 0 : index
    %c0_7 = arith.constant 0 : index
    %7 = vector.load %arg3[%c0_5, %c0_6, %c0_7] : memref<1x1x96xf32, #tpu.memory_space<vmem>>, vector<1x1x96xf32>
    %8 = vector.shape_cast %7 : vector<1x1x96xf32> to vector<1x96xf32>
    %9 = vector.broadcast %8 : vector<1x96xf32> to vector<16x96xf32>
    %10 = arith.addf %6, %9 : vector<16x96xf32>
    %11 = tpu.iota {dimensions = array<i32: 0>} : vector<8x8xi32>
    %12 = tpu.iota {dimensions = array<i32: 1>} : vector<8x8xi32>
    %13 = arith.cmpi sle, %12, %11 : vector<8x8xi32>
    %cst_8 = arith.constant 0.000000e+00 : f32
    %cst_9 = arith.constant -1.000000e+30 : f32
    %14 = vector.broadcast %cst_8 : f32 to vector<8x8xf32>
    %15 = vector.broadcast %cst_9 : f32 to vector<8x8xf32>
    %16 = arith.select %13, %14, %15 : vector<8x8xi1>, vector<8x8xf32>
    %17 = vector.extract_strided_slice %10 {offsets = [0, 0], sizes = [16, 8], strides = [1, 1]} : vector<16x96xf32> to vector<16x8xf32>
    %18 = vector.shape_cast %17 : vector<16x8xf32> to vector<2x8x8xf32>
    %19 = vector.extract_strided_slice %10 {offsets = [0, 32], sizes = [16, 8], strides = [1, 1]} : vector<16x96xf32> to vector<16x8xf32>
    %20 = vector.shape_cast %19 : vector<16x8xf32> to vector<2x8x8xf32>
    %21 = vector.extract_strided_slice %10 {offsets = [0, 64], sizes = [16, 8], strides = [1, 1]} : vector<16x96xf32> to vector<16x8xf32>
    %22 = vector.shape_cast %21 : vector<16x8xf32> to vector<2x8x8xf32>
    "tpu.trace_start"() <{level = 10 : i32, message = "bqe,bke->bqk"}> : () -> ()
    %cst_10 = arith.constant dense<0.000000e+00> : vector<2x8x8xf32>
    %23 = tpu.matmul %18, %20, %cst_10 {dimension_numbers = #tpu.dot_dimension_numbers<[2], [2], [1], [1], [0, 0, 0, 1, 1, 1], [0], [0]>} : vector<2x8x8xf32>, vector<2x8x8xf32>, vector<2x8x8xf32> -> vector<2x8x8xf32>
    "tpu.trace_stop"() : () -> ()
    %cst_11 = arith.constant 0.353553385 : f32
    %24 = vector.broadcast %cst_11 : f32 to vector<2x8x8xf32>
    %25 = arith.mulf %23, %24 : vector<2x8x8xf32>
    %26 = vector.shape_cast %16 : vector<8x8xf32> to vector<1x8x8xf32>
    %27 = vector.broadcast %26 : vector<1x8x8xf32> to vector<2x8x8xf32>
    %28 = arith.addf %25, %27 : vector<2x8x8xf32>
    %cst_12 = arith.constant dense<0xFF800000> : vector<2x8xf32>
    %29 = vector.multi_reduction <maximumf>, %28, %cst_12 [2] : vector<2x8x8xf32> to vector<2x8xf32>
    %30 = vector.shape_cast %29 : vector<2x8xf32> to vector<2x8x1xf32>
    %31 = vector.broadcast %30 : vector<2x8x1xf32> to vector<2x8x8xf32>
    %32 = arith.subf %28, %31 : vector<2x8x8xf32>
    %33 = math.exp %32 : vector<2x8x8xf32>
    %cst_13 = arith.constant dense<0.000000e+00> : vector<2x8xf32>
    %34 = vector.multi_reduction <add>, %33, %cst_13 [2] : vector<2x8x8xf32> to vector<2x8xf32>
    %35 = vector.shape_cast %34 : vector<2x8xf32> to vector<2x8x1xf32>
    %36 = tpu.reciprocal %35 {approx = true} : vector<2x8x1xf32> -> vector<2x8x1xf32>
    %37 = vector.broadcast %36 : vector<2x8x1xf32> to vector<2x8x8xf32>
    %38 = arith.mulf %33, %37 : vector<2x8x8xf32>
    "tpu.trace_start"() <{level = 10 : i32, message = "bqk,bke->bqe"}> : () -> ()
    %cst_14 = arith.constant dense<0.000000e+00> : vector<2x8x8xf32>
    %39 = tpu.matmul %38, %22, %cst_14 {dimension_numbers = #tpu.dot_dimension_numbers<[2], [1], [1], [2], [0, 0, 0, 1, 1, 2], [0], [0]>} : vector<2x8x8xf32>, vector<2x8x8xf32>, vector<2x8x8xf32> -> vector<2x8x8xf32>
    "tpu.trace_stop"() : () -> ()
    %40 = vector.shape_cast %39 : vector<2x8x8xf32> to vector<16x8xf32>
    %41 = vector.extract_strided_slice %10 {offsets = [0, 8], sizes = [16, 8], strides = [1, 1]} : vector<16x96xf32> to vector<16x8xf32>
    %42 = vector.shape_cast %41 : vector<16x8xf32> to vector<2x8x8xf32>
    %43 = vector.extract_strided_slice %10 {offsets = [0, 40], sizes = [16, 8], strides = [1, 1]} : vector<16x96xf32> to vector<16x8xf32>
    %44 = vector.shape_cast %43 : vector<16x8xf32> to vector<2x8x8xf32>
    %45 = vector.extract_strided_slice %10 {offsets = [0, 72], sizes = [16, 8], strides = [1, 1]} : vector<16x96xf32> to vector<16x8xf32>
    %46 = vector.shape_cast %45 : vector<16x8xf32> to vector<2x8x8xf32>
    "tpu.trace_start"() <{level = 10 : i32, message = "bqe,bke->bqk"}> : () -> ()
    %cst_15 = arith.constant dense<0.000000e+00> : vector<2x8x8xf32>
    %47 = tpu.matmul %42, %44, %cst_15 {dimension_numbers = #tpu.dot_dimension_numbers<[2], [2], [1], [1], [0, 0, 0, 1, 1, 1], [0], [0]>} : vector<2x8x8xf32>, vector<2x8x8xf32>, vector<2x8x8xf32> -> vector<2x8x8xf32>
    "tpu.trace_stop"() : () -> ()
    %cst_16 = arith.constant 0.353553385 : f32
    %48 = vector.broadcast %cst_16 : f32 to vector<2x8x8xf32>
    %49 = arith.mulf %47, %48 : vector<2x8x8xf32>
    %50 = vector.shape_cast %16 : vector<8x8xf32> to vector<1x8x8xf32>
    %51 = vector.broadcast %50 : vector<1x8x8xf32> to vector<2x8x8xf32>
    %52 = arith.addf %49, %51 : vector<2x8x8xf32>
    %cst_17 = arith.constant dense<0xFF800000> : vector<2x8xf32>
    %53 = vector.multi_reduction <maximumf>, %52, %cst_17 [2] : vector<2x8x8xf32> to vector<2x8xf32>
    %54 = vector.shape_cast %53 : vector<2x8xf32> to vector<2x8x1xf32>
    %55 = vector.broadcast %54 : vector<2x8x1xf32> to vector<2x8x8xf32>
    %56 = arith.subf %52, %55 : vector<2x8x8xf32>
    %57 = math.exp %56 : vector<2x8x8xf32>
    %cst_18 = arith.constant dense<0.000000e+00> : vector<2x8xf32>
    %58 = vector.multi_reduction <add>, %57, %cst_18 [2] : vector<2x8x8xf32> to vector<2x8xf32>
    %59 = vector.shape_cast %58 : vector<2x8xf32> to vector<2x8x1xf32>
    %60 = tpu.reciprocal %59 {approx = true} : vector<2x8x1xf32> -> vector<2x8x1xf32>
    %61 = vector.broadcast %60 : vector<2x8x1xf32> to vector<2x8x8xf32>
    %62 = arith.mulf %57, %61 : vector<2x8x8xf32>
    "tpu.trace_start"() <{level = 10 : i32, message = "bqk,bke->bqe"}> : () -> ()
    %cst_19 = arith.constant dense<0.000000e+00> : vector<2x8x8xf32>
    %63 = tpu.matmul %62, %46, %cst_19 {dimension_numbers = #tpu.dot_dimension_numbers<[2], [1], [1], [2], [0, 0, 0, 1, 1, 2], [0], [0]>} : vector<2x8x8xf32>, vector<2x8x8xf32>, vector<2x8x8xf32> -> vector<2x8x8xf32>
    "tpu.trace_stop"() : () -> ()
    %64 = vector.shape_cast %63 : vector<2x8x8xf32> to vector<16x8xf32>
    %65 = vector.extract_strided_slice %10 {offsets = [0, 16], sizes = [16, 8], strides = [1, 1]} : vector<16x96xf32> to vector<16x8xf32>
    %66 = vector.shape_cast %65 : vector<16x8xf32> to vector<2x8x8xf32>
    %67 = vector.extract_strided_slice %10 {offsets = [0, 48], sizes = [16, 8], strides = [1, 1]} : vector<16x96xf32> to vector<16x8xf32>
    %68 = vector.shape_cast %67 : vector<16x8xf32> to vector<2x8x8xf32>
    %69 = vector.extract_strided_slice %10 {offsets = [0, 80], sizes = [16, 8], strides = [1, 1]} : vector<16x96xf32> to vector<16x8xf32>
    %70 = vector.shape_cast %69 : vector<16x8xf32> to vector<2x8x8xf32>
    "tpu.trace_start"() <{level = 10 : i32, message = "bqe,bke->bqk"}> : () -> ()
    %cst_20 = arith.constant dense<0.000000e+00> : vector<2x8x8xf32>
    %71 = tpu.matmul %66, %68, %cst_20 {dimension_numbers = #tpu.dot_dimension_numbers<[2], [2], [1], [1], [0, 0, 0, 1, 1, 1], [0], [0]>} : vector<2x8x8xf32>, vector<2x8x8xf32>, vector<2x8x8xf32> -> vector<2x8x8xf32>
    "tpu.trace_stop"() : () -> ()
    %cst_21 = arith.constant 0.353553385 : f32
    %72 = vector.broadcast %cst_21 : f32 to vector<2x8x8xf32>
    %73 = arith.mulf %71, %72 : vector<2x8x8xf32>
    %74 = vector.shape_cast %16 : vector<8x8xf32> to vector<1x8x8xf32>
    %75 = vector.broadcast %74 : vector<1x8x8xf32> to vector<2x8x8xf32>
    %76 = arith.addf %73, %75 : vector<2x8x8xf32>
    %cst_22 = arith.constant dense<0xFF800000> : vector<2x8xf32>
    %77 = vector.multi_reduction <maximumf>, %76, %cst_22 [2] : vector<2x8x8xf32> to vector<2x8xf32>
    %78 = vector.shape_cast %77 : vector<2x8xf32> to vector<2x8x1xf32>
    %79 = vector.broadcast %78 : vector<2x8x1xf32> to vector<2x8x8xf32>
    %80 = arith.subf %76, %79 : vector<2x8x8xf32>
    %81 = math.exp %80 : vector<2x8x8xf32>
    %cst_23 = arith.constant dense<0.000000e+00> : vector<2x8xf32>
    %82 = vector.multi_reduction <add>, %81, %cst_23 [2] : vector<2x8x8xf32> to vector<2x8xf32>
    %83 = vector.shape_cast %82 : vector<2x8xf32> to vector<2x8x1xf32>
    %84 = tpu.reciprocal %83 {approx = true} : vector<2x8x1xf32> -> vector<2x8x1xf32>
    %85 = vector.broadcast %84 : vector<2x8x1xf32> to vector<2x8x8xf32>
    %86 = arith.mulf %81, %85 : vector<2x8x8xf32>
    "tpu.trace_start"() <{level = 10 : i32, message = "bqk,bke->bqe"}> : () -> ()
    %cst_24 = arith.constant dense<0.000000e+00> : vector<2x8x8xf32>
    %87 = tpu.matmul %86, %70, %cst_24 {dimension_numbers = #tpu.dot_dimension_numbers<[2], [1], [1], [2], [0, 0, 0, 1, 1, 2], [0], [0]>} : vector<2x8x8xf32>, vector<2x8x8xf32>, vector<2x8x8xf32> -> vector<2x8x8xf32>
    "tpu.trace_stop"() : () -> ()
    %88 = vector.shape_cast %87 : vector<2x8x8xf32> to vector<16x8xf32>
    %89 = vector.extract_strided_slice %10 {offsets = [0, 24], sizes = [16, 8], strides = [1, 1]} : vector<16x96xf32> to vector<16x8xf32>
    %90 = vector.shape_cast %89 : vector<16x8xf32> to vector<2x8x8xf32>
    %91 = vector.extract_strided_slice %10 {offsets = [0, 56], sizes = [16, 8], strides = [1, 1]} : vector<16x96xf32> to vector<16x8xf32>
    %92 = vector.shape_cast %91 : vector<16x8xf32> to vector<2x8x8xf32>
    %93 = vector.extract_strided_slice %10 {offsets = [0, 88], sizes = [16, 8], strides = [1, 1]} : vector<16x96xf32> to vector<16x8xf32>
    %94 = vector.shape_cast %93 : vector<16x8xf32> to vector<2x8x8xf32>
    "tpu.trace_start"() <{level = 10 : i32, message = "bqe,bke->bqk"}> : () -> ()
    %cst_25 = arith.constant dense<0.000000e+00> : vector<2x8x8xf32>
    %95 = tpu.matmul %90, %92, %cst_25 {dimension_numbers = #tpu.dot_dimension_numbers<[2], [2], [1], [1], [0, 0, 0, 1, 1, 1], [0], [0]>} : vector<2x8x8xf32>, vector<2x8x8xf32>, vector<2x8x8xf32> -> vector<2x8x8xf32>
    "tpu.trace_stop"() : () -> ()
    %cst_26 = arith.constant 0.353553385 : f32
    %96 = vector.broadcast %cst_26 : f32 to vector<2x8x8xf32>
    %97 = arith.mulf %95, %96 : vector<2x8x8xf32>
    %98 = vector.shape_cast %16 : vector<8x8xf32> to vector<1x8x8xf32>
    %99 = vector.broadcast %98 : vector<1x8x8xf32> to vector<2x8x8xf32>
    %100 = arith.addf %97, %99 : vector<2x8x8xf32>
    %cst_27 = arith.constant dense<0xFF800000> : vector<2x8xf32>
    %101 = vector.multi_reduction <maximumf>, %100, %cst_27 [2] : vector<2x8x8xf32> to vector<2x8xf32>
    %102 = vector.shape_cast %101 : vector<2x8xf32> to vector<2x8x1xf32>
    %103 = vector.broadcast %102 : vector<2x8x1xf32> to vector<2x8x8xf32>
    %104 = arith.subf %100, %103 : vector<2x8x8xf32>
    %105 = math.exp %104 : vector<2x8x8xf32>
    %cst_28 = arith.constant dense<0.000000e+00> : vector<2x8xf32>
    %106 = vector.multi_reduction <add>, %105, %cst_28 [2] : vector<2x8x8xf32> to vector<2x8xf32>
    %107 = vector.shape_cast %106 : vector<2x8xf32> to vector<2x8x1xf32>
    %108 = tpu.reciprocal %107 {approx = true} : vector<2x8x1xf32> -> vector<2x8x1xf32>
    %109 = vector.broadcast %108 : vector<2x8x1xf32> to vector<2x8x8xf32>
    %110 = arith.mulf %105, %109 : vector<2x8x8xf32>
    "tpu.trace_start"() <{level = 10 : i32, message = "bqk,bke->bqe"}> : () -> ()
    %cst_29 = arith.constant dense<0.000000e+00> : vector<2x8x8xf32>
    %111 = tpu.matmul %110, %94, %cst_29 {dimension_numbers = #tpu.dot_dimension_numbers<[2], [1], [1], [2], [0, 0, 0, 1, 1, 2], [0], [0]>} : vector<2x8x8xf32>, vector<2x8x8xf32>, vector<2x8x8xf32> -> vector<2x8x8xf32>
    "tpu.trace_stop"() : () -> ()
    %112 = vector.shape_cast %111 : vector<2x8x8xf32> to vector<16x8xf32>
    %113 = tpu.concatenate %40, %64, %88, %112 in 1 : vector<16x8xf32>, vector<16x8xf32>, vector<16x8xf32>, vector<16x8xf32> -> vector<16x32xf32>
    %c0_30 = arith.constant 0 : index
    %c0_31 = arith.constant 0 : index
    %c0_32 = arith.constant 0 : index
    %114 = vector.load %arg4[%c0_30, %c0_31, %c0_32] : memref<1x32x32xf32, #tpu.memory_space<vmem>>, vector<1x32x32xf32>
    %115 = vector.shape_cast %114 : vector<1x32x32xf32> to vector<32x32xf32>
    %cst_33 = arith.constant dense<0.000000e+00> : vector<16x32xf32>
    %116 = tpu.matmul %113, %115, %cst_33 {dimension_numbers = #tpu.dot_dimension_numbers<[1], [0], [0], [1], [0, 0, 1, 1], [], []>} : vector<16x32xf32>, vector<32x32xf32>, vector<16x32xf32> -> vector<16x32xf32>
    %c0_34 = arith.constant 0 : index
    %c0_35 = arith.constant 0 : index
    %c0_36 = arith.constant 0 : index
    %117 = vector.load %arg5[%c0_34, %c0_35, %c0_36] : memref<1x1x32xf32, #tpu.memory_space<vmem>>, vector<1x1x32xf32>
    %118 = vector.shape_cast %117 : vector<1x1x32xf32> to vector<1x32xf32>
    %119 = vector.broadcast %118 : vector<1x32xf32> to vector<16x32xf32>
    %120 = arith.addf %116, %119 : vector<16x32xf32>
    %121 = arith.addf %3, %120 : vector<16x32xf32>
    %cst_37 = arith.constant dense<0.000000e+00> : vector<16xf32>
    %122 = vector.multi_reduction <add>, %121, %cst_37 [1] : vector<16x32xf32> to vector<16xf32>
    %123 = vector.shape_cast %122 : vector<16xf32> to vector<16x1xf32>
    %cst_38 = arith.constant 3.200000e+01 : f32
    %124 = vector.broadcast %cst_38 : f32 to vector<16x1xf32>
    %125 = arith.divf %123, %124 : vector<16x1xf32>
    %126 = vector.broadcast %125 : vector<16x1xf32> to vector<16x32xf32>
    %127 = arith.subf %121, %126 : vector<16x32xf32>
    %128 = arith.mulf %127, %127 : vector<16x32xf32>
    %cst_39 = arith.constant dense<0.000000e+00> : vector<16xf32>
    %129 = vector.multi_reduction <add>, %128, %cst_39 [1] : vector<16x32xf32> to vector<16xf32>
    %130 = vector.shape_cast %129 : vector<16xf32> to vector<16x1xf32>
    %cst_40 = arith.constant 3.200000e+01 : f32
    %131 = vector.broadcast %cst_40 : f32 to vector<16x1xf32>
    %132 = arith.divf %130, %131 : vector<16x1xf32>
    %133 = vector.broadcast %125 : vector<16x1xf32> to vector<16x32xf32>
    %134 = arith.subf %121, %133 : vector<16x32xf32>
    %cst_41 = arith.constant 9.99999974E-6 : f32
    %135 = vector.broadcast %cst_41 : f32 to vector<16x1xf32>
    %136 = arith.addf %132, %135 : vector<16x1xf32>
    %137 = math.rsqrt %136 : vector<16x1xf32>
    %138 = vector.broadcast %137 : vector<16x1xf32> to vector<16x32xf32>
    %139 = arith.mulf %134, %138 : vector<16x32xf32>
    %c0_42 = arith.constant 0 : index
    %c0_43 = arith.constant 0 : index
    %c0_44 = arith.constant 0 : index
    %140 = vector.load %arg6[%c0_42, %c0_43, %c0_44] : memref<1x1x32xf32, #tpu.memory_space<vmem>>, vector<1x1x32xf32>
    %141 = vector.shape_cast %140 : vector<1x1x32xf32> to vector<1x32xf32>
    %142 = vector.broadcast %141 : vector<1x32xf32> to vector<16x32xf32>
    %143 = arith.mulf %139, %142 : vector<16x32xf32>
    %c0_45 = arith.constant 0 : index
    %c0_46 = arith.constant 0 : index
    %c0_47 = arith.constant 0 : index
    %144 = vector.load %arg7[%c0_45, %c0_46, %c0_47] : memref<1x1x32xf32, #tpu.memory_space<vmem>>, vector<1x1x32xf32>
    %145 = vector.shape_cast %144 : vector<1x1x32xf32> to vector<1x32xf32>
    %146 = vector.broadcast %145 : vector<1x32xf32> to vector<16x32xf32>
    %147 = arith.addf %143, %146 : vector<16x32xf32>
    %148 = arith.truncf %147 : vector<16x32xf32> to vector<16x32xbf16>
    %c0_48 = arith.constant 0 : index
    %c0_49 = arith.constant 0 : index
    %c0_50 = arith.constant 0 : index
    %149 = vector.load %arg8[%c0_48, %c0_49, %c0_50] : memref<1x32x2048xbf16, #tpu.memory_space<vmem>>, vector<1x32x2048xbf16>
    %150 = vector.shape_cast %149 : vector<1x32x2048xbf16> to vector<32x2048xbf16>
    %cst_51 = arith.constant dense<0.000000e+00> : vector<16x2048xf32>
    %151 = tpu.matmul %148, %150, %cst_51 {dimension_numbers = #tpu.dot_dimension_numbers<[1], [0], [0], [1], [0, 0, 1, 1], [], []>} : vector<16x32xbf16>, vector<32x2048xbf16>, vector<16x2048xf32> -> vector<16x2048xf32>
    %c0_52 = arith.constant 0 : index
    %c0_53 = arith.constant 0 : index
    %c0_54 = arith.constant 0 : index
    %152 = vector.load %arg9[%c0_52, %c0_53, %c0_54] : memref<1x1x2048xf32, #tpu.memory_space<vmem>>, vector<1x1x2048xf32>
    %153 = vector.shape_cast %152 : vector<1x1x2048xf32> to vector<1x2048xf32>
    %154 = vector.broadcast %153 : vector<1x2048xf32> to vector<16x2048xf32>
    %155 = arith.addf %151, %154 : vector<16x2048xf32>
    %cst_55 = arith.constant 0.000000e+00 : f32
    %156 = vector.broadcast %cst_55 : f32 to vector<16x2048xf32>
    %157 = arith.maximumf %155, %156 : vector<16x2048xf32>
    %158 = arith.truncf %157 : vector<16x2048xf32> to vector<16x2048xbf16>
    %c0_56 = arith.constant 0 : index
    %c0_57 = arith.constant 0 : index
    %c0_58 = arith.constant 0 : index
    %159 = vector.load %arg10[%c0_56, %c0_57, %c0_58] : memref<1x2048x32xbf16, #tpu.memory_space<vmem>>, vector<1x2048x32xbf16>
    %160 = vector.shape_cast %159 : vector<1x2048x32xbf16> to vector<2048x32xbf16>
    %cst_59 = arith.constant dense<0.000000e+00> : vector<16x32xf32>
    %161 = tpu.matmul %158, %160, %cst_59 {dimension_numbers = #tpu.dot_dimension_numbers<[1], [0], [0], [1], [0, 0, 1, 1], [], []>} : vector<16x2048xbf16>, vector<2048x32xbf16>, vector<16x32xf32> -> vector<16x32xf32>
    %c0_60 = arith.constant 0 : index
    %c0_61 = arith.constant 0 : index
    %c0_62 = arith.constant 0 : index
    %162 = vector.load %arg11[%c0_60, %c0_61, %c0_62] : memref<1x1x32xf32, #tpu.memory_space<vmem>>, vector<1x1x32xf32>
    %163 = vector.shape_cast %162 : vector<1x1x32xf32> to vector<1x32xf32>
    %164 = vector.broadcast %163 : vector<1x32xf32> to vector<16x32xf32>
    %165 = arith.addf %161, %164 : vector<16x32xf32>
    %166 = arith.addf %147, %165 : vector<16x32xf32>
    %cst_63 = arith.constant dense<0.000000e+00> : vector<16xf32>
    %167 = vector.multi_reduction <add>, %166, %cst_63 [1] : vector<16x32xf32> to vector<16xf32>
    %168 = vector.shape_cast %167 : vector<16xf32> to vector<16x1xf32>
    %cst_64 = arith.constant 3.200000e+01 : f32
    %169 = vector.broadcast %cst_64 : f32 to vector<16x1xf32>
    %170 = arith.divf %168, %169 : vector<16x1xf32>
    %171 = vector.broadcast %170 : vector<16x1xf32> to vector<16x32xf32>
    %172 = arith.subf %166, %171 : vector<16x32xf32>
    %173 = arith.mulf %172, %172 : vector<16x32xf32>
    %cst_65 = arith.constant dense<0.000000e+00> : vector<16xf32>
    %174 = vector.multi_reduction <add>, %173, %cst_65 [1] : vector<16x32xf32> to vector<16xf32>
    %175 = vector.shape_cast %174 : vector<16xf32> to vector<16x1xf32>
    %cst_66 = arith.constant 3.200000e+01 : f32
    %176 = vector.broadcast %cst_66 : f32 to vector<16x1xf32>
    %177 = arith.divf %175, %176 : vector<16x1xf32>
    %178 = vector.broadcast %170 : vector<16x1xf32> to vector<16x32xf32>
    %179 = arith.subf %166, %178 : vector<16x32xf32>
    %cst_67 = arith.constant 9.99999974E-6 : f32
    %180 = vector.broadcast %cst_67 : f32 to vector<16x1xf32>
    %181 = arith.addf %177, %180 : vector<16x1xf32>
    %182 = math.rsqrt %181 : vector<16x1xf32>
    %183 = vector.broadcast %182 : vector<16x1xf32> to vector<16x32xf32>
    %184 = arith.mulf %179, %183 : vector<16x32xf32>
    %c0_68 = arith.constant 0 : index
    %c0_69 = arith.constant 0 : index
    %c0_70 = arith.constant 0 : index
    %185 = vector.load %arg12[%c0_68, %c0_69, %c0_70] : memref<1x1x32xf32, #tpu.memory_space<vmem>>, vector<1x1x32xf32>
    %186 = vector.shape_cast %185 : vector<1x1x32xf32> to vector<1x32xf32>
    %187 = vector.broadcast %186 : vector<1x32xf32> to vector<16x32xf32>
    %188 = arith.mulf %184, %187 : vector<16x32xf32>
    %c0_71 = arith.constant 0 : index
    %c0_72 = arith.constant 0 : index
    %c0_73 = arith.constant 0 : index
    %189 = vector.load %arg13[%c0_71, %c0_72, %c0_73] : memref<1x1x32xf32, #tpu.memory_space<vmem>>, vector<1x1x32xf32>
    %190 = vector.shape_cast %189 : vector<1x1x32xf32> to vector<1x32xf32>
    %191 = vector.broadcast %190 : vector<1x32xf32> to vector<16x32xf32>
    %192 = arith.addf %188, %191 : vector<16x32xf32>
    %c0_74 = arith.constant 0 : index
    %c0_75 = arith.constant 0 : index
    %193 = vector.load %arg15[%c0_74, %c0_75] : memref<16x32xf32, #tpu.memory_space<vmem>>, vector<16x32xf32>
    tpu.vector_store %arg15[%c0_74, %c0_75], %192 {strides = array<i32>} : memref<16x32xf32, #tpu.memory_space<vmem>>, vector<16x32xf32>,
    %c1_i32 = arith.constant 1 : i32
    %194 = arith.cmpi eq, %arg0, %c1_i32 : i32
    %195 = arith.extui %194 : i1 to i32
    %c0_i32_76 = arith.constant 0 : i32
    %196 = arith.cmpi ne, %195, %c0_i32_76 : i32
    scf.if %196 {
      %197 = vector.shape_cast %192 : vector<16x32xf32> to vector<2x8x32xf32>
      %c0_77 = arith.constant 0 : index
      %c0_78 = arith.constant 0 : index
      %c0_79 = arith.constant 0 : index
      %198 = vector.load %arg14[%c0_77, %c0_78, %c0_79] : memref<2x8x32xf32, #tpu.memory_space<vmem>>, vector<2x8x32xf32>
      tpu.vector_store %arg14[%c0_77, %c0_78, %c0_79], %197 {strides = array<i32>} : memref<2x8x32xf32, #tpu.memory_space<vmem>>, vector<2x8x32xf32>,
    } else {
    }
    return
  }
  func.func @transform_0(%arg0: i32) -> (i32, i32, i32) {
    %c0_i32 = arith.constant 0 : i32
    %c0_i32_0 = arith.constant 0 : i32
    %c0_i32_1 = arith.constant 0 : i32
    %c0_i32_2 = arith.constant 0 : i32
    return %c0_i32, %c0_i32_0, %c0_i32_1 : i32, i32, i32
  }
  func.func @transform_1(%arg0: i32) -> (i32, i32, i32) {
    %c0_i32 = arith.constant 0 : i32
    %c0_i32_0 = arith.constant 0 : i32
    %c0_i32_1 = arith.constant 0 : i32
    return %arg0, %c0_i32, %c0_i32_0 : i32, i32, i32
  }
  func.func @transform_2(%arg0: i32) -> (i32, i32, i32) {
    %c0_i32 = arith.constant 0 : i32
    %c0_i32_0 = arith.constant 0 : i32
    %c0_i32_1 = arith.constant 0 : i32
    return %arg0, %c0_i32, %c0_i32_0 : i32, i32, i32
  }
  func.func @transform_3(%arg0: i32) -> (i32, i32, i32) {
    %c0_i32 = arith.constant 0 : i32
    %c0_i32_0 = arith.constant 0 : i32
    %c0_i32_1 = arith.constant 0 : i32
    return %arg0, %c0_i32, %c0_i32_0 : i32, i32, i32
  }
  func.func @transform_4(%arg0: i32) -> (i32, i32, i32) {
    %c0_i32 = arith.constant 0 : i32
    %c0_i32_0 = arith.constant 0 : i32
    %c0_i32_1 = arith.constant 0 : i32
    return %arg0, %c0_i32, %c0_i32_0 : i32, i32, i32
  }
  func.func @transform_5(%arg0: i32) -> (i32, i32, i32) {
    %c0_i32 = arith.constant 0 : i32
    %c0_i32_0 = arith.constant 0 : i32
    %c0_i32_1 = arith.constant 0 : i32
    return %arg0, %c0_i32, %c0_i32_0 : i32, i32, i32
  }
  func.func @transform_6(%arg0: i32) -> (i32, i32, i32) {
    %c0_i32 = arith.constant 0 : i32
    %c0_i32_0 = arith.constant 0 : i32
    %c0_i32_1 = arith.constant 0 : i32
    return %arg0, %c0_i32, %c0_i32_0 : i32, i32, i32
  }
  func.func @transform_7(%arg0: i32) -> (i32, i32, i32) {
    %c0_i32 = arith.constant 0 : i32
    %c0_i32_0 = arith.constant 0 : i32
    %c0_i32_1 = arith.constant 0 : i32
    return %arg0, %c0_i32, %c0_i32_0 : i32, i32, i32
  }
  func.func @transform_8(%arg0: i32) -> (i32, i32, i32) {
    %c0_i32 = arith.constant 0 : i32
    %c0_i32_0 = arith.constant 0 : i32
    %c0_i32_1 = arith.constant 0 : i32
    return %arg0, %c0_i32, %c0_i32_0 : i32, i32, i32
  }
  func.func @transform_9(%arg0: i32) -> (i32, i32, i32) {
    %c0_i32 = arith.constant 0 : i32
    %c0_i32_0 = arith.constant 0 : i32
    %c0_i32_1 = arith.constant 0 : i32
    return %arg0, %c0_i32, %c0_i32_0 : i32, i32, i32
  }
  func.func @transform_10(%arg0: i32) -> (i32, i32, i32) {
    %c0_i32 = arith.constant 0 : i32
    %c0_i32_0 = arith.constant 0 : i32
    %c0_i32_1 = arith.constant 0 : i32
    return %arg0, %c0_i32, %c0_i32_0 : i32, i32, i32
  }
  func.func @transform_11(%arg0: i32) -> (i32, i32, i32) {
    %c0_i32 = arith.constant 0 : i32
    %c0_i32_0 = arith.constant 0 : i32
    %c0_i32_1 = arith.constant 0 : i32
    return %arg0, %c0_i32, %c0_i32_0 : i32, i32, i32
  }
  func.func @transform_12(%arg0: i32) -> (i32, i32, i32) {
    %c0_i32 = arith.constant 0 : i32
    %c0_i32_0 = arith.constant 0 : i32
    %c0_i32_1 = arith.constant 0 : i32
    return %arg0, %c0_i32, %c0_i32_0 : i32, i32, i32
  }
  func.func @transform_13(%arg0: i32) -> (i32, i32, i32) {
    %c0_i32 = arith.constant 0 : i32
    %c0_i32_0 = arith.constant 0 : i32
    %c0_i32_1 = arith.constant 0 : i32
    %c0_i32_2 = arith.constant 0 : i32
    return %c0_i32, %c0_i32_0, %c0_i32_1 : i32, i32, i32
  }
}

</mosaic_0001>

<bundles_post_ra>
// kernel: tpu_custom_call.1
= control target key start
LH: loop header
LB: loop body
LE: loop exit
PB: predicated region body
PF: predicated region fallthrough
CT: control target
= control target key end

     0   :  { %s4923_s0 = inlined_call_operand.vmem [shape: f32[2,8,32], index: 0, kind: input, shape index: {}]   ;;  %s4924_s1 = inlined_call_operand.vmem [shape: f32[2,32,96], index: 1, kind: input, shape index: {}]   ;;  %s4925_s2 = inlined_call_operand.vmem [shape: f32[2,1,96], index: 2, kind: input, shape index: {}]   ;;  %s4926_s3 = inlined_call_operand.vmem [shape: f32[2,32,32], index: 3, kind: input, shape index: {}]   ;;  %s4927_s4 = inlined_call_operand.vmem [shape: f32[2,1,32], index: 4, kind: input, shape index: {}]   ;;  %s4928_s5 = inlined_call_operand.vmem [shape: f32[2,1,32], index: 5, kind: input, shape index: {}]   ;;  %s4929_s6 = inlined_call_operand.vmem [shape: f32[2,1,32], index: 6, kind: input, shape index: {}]   ;;  %s4930_s7 = inlined_call_operand.vmem [shape: bf16[2,32,2048], index: 7, kind: input, shape index: {}]   ;;  %s4931_s8 = inlined_call_operand.vmem [shape: f32[2,1,2048], index: 8, kind: input, shape index: {}]   ;;  %s4932_s9 = inlined_call_operand.vmem [shape: bf16[2,2048,32], index: 9, kind: input, shape index: {}]   ;;  %s4933_s10 = inlined_call_operand.vmem [shape: f32[2,1,32], index: 10, kind: input, shape index: {}]   ;;  %s4934_s11 = inlined_call_operand.vmem [shape: f32[2,1,32], index: 11, kind: input, shape index: {}]   ;;  %s4935_s12 = inlined_call_operand.vmem [shape: f32[2,1,32], index: 12, kind: input, shape index: {}]   ;;  %s4936_s13 = inlined_call_operand.hbm [shape: f32[2,8,32], index: 13, kind: output, shape index: {}]  }
   0x1   :  { %4939 = sst [smem:[#allocation7_spill]] %s4923_s0 }
   0x2   :  { %4940 = sst [smem:[#allocation8_spill]] %s4924_s1 }
   0x3   :  { %4941 = sst [smem:[#allocation9_spill]] %s4926_s3 }
   0x4   :  { %4942 = sst [smem:[#allocation10_spill]] %s4936_s13 }
   0x5   :  { %18 = vsyncpa [#allocation4], 0  ;;  %s4396_s25 = smov 0  }
   0x6 LB: > { %4943 = sst [smem:[#allocation6_spill]] %s4306_s25  ;;  %s4402_s26 = sadd.s32 4294967295, %s4306_s25   ;;  %s4306_s25 = sphi %s4396_s25, %s24_s25  }
   0x7   : > { %p3313_p0 = scmp.ge.s32.totalorder %s4306_s25, 1  ;;  %p478_p1 = scmp.lt.s32.totalorder %s4306_s25, 3 }
   0x9   : > { %p479_p2 = pnand %p3313_p0, %p478_p1 }
   0xa   : > { %p557_p3 = scmp.lt.s32.totalorder (!%p479_p2), %s4402_s26, 1  ;;  %s4944_s1 = sld [smem:[#allocation8_spill]] (!%p479_p2) }
   0xb   : > { %482 = sbr.rel (%p479_p2) target bundleno = 2053 (0x805), region = 72  ;;  %s4945_s3 = sld [smem:[#allocation9_spill]] (!%p479_p2) }
   0xc   : > { %p3323_p4 = scmp.ne.s32.totalorder (!%p479_p2), %s4402_s26, 0 }
  0x10   : > { %s4408_s27 = scalar_select %p557_p3, %s4402_s26, 1 }
  0x11   : > { %s4946_s23 = sld [smem:[#allocation7_spill]] (!%p3323_p4) }
  0x12   : > { %s4013_s28 = sshll.u32 %s4408_s27, 5  ;;  %s4015_s14 = sshll.u32 %s4408_s27, 8 }
  0x13   : > { %s561_s17 = scalar_lea.vmem %s4944_s1, %s4013_s28  ;;  %s4421_s20 = scalar_lea.vmem %s4945_s3, %s4013_s28 }
  0x14   : > { %s4439_s1 = scalar_lea.vmem %s4930_s7, %s4015_s14  ;;  %s3320_s28 = sshll.u32 %s4408_s27, 4 }
  0x15   : > { %s4445_s21 = scalar_lea.vmem %s4931_s8, %s3320_s28  ;;  %s4016_s22 = sshll.u32 %s4408_s27, 10 }
  0x16   : > { %s4451_s24 = scalar_lea.vmem %s4932_s9, %s4016_s22  ;;  %s595_s30 = scalar_lea.vmem %s4933_s10, %s4408_s27 }
  0x17   : > { %s598_s14 = scalar_lea.vmem %s4934_s11, %s4408_s27  ;;  %s601_s18 = scalar_lea.vmem %s4935_s12, %s4408_s27 }
  0x18   : > { %606 = sbr.rel (%p3323_p4) target bundleno = 32 (0x20), region = 76 }
  0x1d   : > { %v607_v0 = vld [vmem:[%s4946_s23] sm:$0xff]  ;;  %vm609_vm0 = vcmask 261120   ;;  %v608_v1 = vld [vmem:[%s4946_s23 + $0x8] sm:$0xff] }
  0x1e   : > { %610 = vst.msk [vmem:[#allocation2] sm:$0xff] %vm609_vm0, %v607_v0 }
  0x1f   : > { %611 = vst.msk [vmem:[#allocation2 + $0x8] sm:$0xff] %vm609_vm0, %v608_v1 }
  0x20 PF: > { %v617_v2 = vld [vmem:[%s561_s17 + $0x18] sm:$0xff]  ;;  %v616_v3 = vld [vmem:[%s561_s17 + $0x10] sm:$0xff]  ;;  %v615_v4 = vld [vmem:[%s561_s17 + $0x8] sm:$0xff]  ;;  %vm622_vm1 = vcmask 261120   ;;  %s4947_s0 = scalar_lea.vmem %s4925_s2, %s4408_s27  ;;  %s4309_s29 = smov 96   ;;  %vm661_vm2 = vcmask 64512   ;;  %v652_v27 = vlaneseq }
  0x21   : > { %641 = vmatpush.msra.mxu0 %v617_v2  ;;  %v614_v5 = vld [vmem:[%s561_s17] sm:$0xff]  ;;  %s4308_s17 = smov 88   ;;  %s4310_s15 = smov 80   ;;  %v4315_v31 = vmov -1e+30   ;;  %vm1219_vm4 = vcmask 130048  }
  0x22   : > { %v4219_v8 = vld [vmem:[%s4947_s0] ss:$0 sm:$0xff]  ;;  %s4311_s16 = smov 120   ;;  %s4312_s28 = smov 72   ;;  %v653_v28 = vshrl.u32 %v652_v27, 7  ;;  %v655_v29 = vand.u32 127, %v652_v27 }
  0x23   : > { %642 = vmatpush.msra.mxu0 %v616_v3  ;;  %s4313_s19 = smov 112   ;;  %s4314_s22 = smov 104   ;;  %vm1222_vm5 = vcmask 195584  }
  0x24   : > { %vm656_vm3 = vcmp.le.s32.totalorder %v655_v29, %v653_v28  ;;  %s4316_s25 = smov 56   ;;  %s4317_s3 = smov 64  }
  0x25   : > { %643 = vmatpush.msra.mxu0 %v615_v4  ;;  %v4472_v6 = vld [vmem:[#allocation2] sm:$0xff]  ;;  %v657_v32 = vsel %vm656_vm3, 0.0, %v4315_v31  ;;  %s4318_s13 = smov 48   ;;  %s4319_s0 = smov 40  }
  0x26   : > { %v4476_v7 = vld [vmem:[#allocation2 + $0x8] sm:$0xff]  ;;  %p4008_p5 = scmp.ne.s32.totalorder %s4402_s26, 1 }
  0x27   : > { %644 = vmatpush.msra.mxu0 %v614_v5 }
  0x28   : > { %3324 = vmatmul.msk.f32.vlgmr.msra.gmra.mxu0 %vm622_vm1, %v4472_v6 }
  0x30   : > { %3325 = vmatmul.msk.f32.gmra.mxu0 %vm622_vm1, %v4476_v7 }
  0xa5   : > { %v646_v9 = vpop.f32.mrf.mxu0 }
  0xa6   : > { %v4485_v10 = vadd.f32 %v4219_v8, %v646_v9 }
  0xa8   : > { %793 = vrot.lane.b32.xlu2 %v4485_v10, %s4308_s17  ;;  %659 = vrot.lane.b32.xlu0 %v4485_v10, %s4309_s29 }
  0xad   : > { %v649_v11 = vpop.f32.mrf.mxu0 }
  0xae   : > { %v4489_v12 = vadd.f32 %v4219_v8, %v649_v11 }
  0xb0   : > { %821 = vrot.lane.b32.xlu1 %v4489_v12, %s4308_s17  ;;  %927 = vrot.lane.b32.xlu2 %v4485_v10, %s4310_s15  ;;  %v4214_v54 = vpack.i.bf16 %v4489_v12, %v4485_v10  ;;  %s4320_s17 = smov 8  }
  0xb1   : > { %687 = vrot.lane.b32.xlu0 %v4489_v12, %s4309_s29  ;;  %s4321_s29 = smov 16  }
  0xb8   : > { %819 = vrot.lane.b32.xlu1 %v4489_v12, %s4311_s16  ;;  %1061 = vrot.lane.b32.xlu2 %v4485_v10, %s4312_s28 }
  0xb9   : > { %791 = vrot.lane.b32.xlu0 %v4485_v10, %s4311_s16 }
  0xc0   : > { %925 = vrot.lane.b32.xlu1 %v4485_v10, %s4313_s19  ;;  %953 = vrot.lane.b32.xlu2 %v4489_v12, %s4313_s19 }
  0xc1   : > { %1059 = vrot.lane.b32.xlu0 %v4485_v10, %s4314_s22 }
  0xc8   : > { %955 = vrot.lane.b32.xlu1 %v4489_v12, %s4310_s15  ;;  %s4322_s15 = smov 24  }
  0xc9   : > { %1089 = vrot.lane.b32.xlu0 %v4489_v12, %s4312_s28  ;;  %s4948_s28 = scalar_lea.vmem %s4927_s4, %s4408_s27 }
  0xd0   : > { %1087 = vrot.lane.b32.xlu1 %v4489_v12, %s4314_s22 }
 0x102   : > { %v794_v13 = vpop.permute.xlu2 %793 }
 0x10a   : > { %v928_v15 = vpop.permute.xlu2 %927 }
 0x112   : > { %v1062_v19 = vpop.permute.xlu2 %1061 }
 0x11a   : > { %v660_v14 = vpop.permute.xlu0 %659  ;;  %v954_v25 = vpop.permute.xlu2 %953 }
 0x11b   : > { %3326 = vmatpush.xpose.msk.msra.mxu1 %vm661_vm2, %v660_v14 }
 0x11e   : > { %3327 = vmatmul.msk.f32.vlgmr.msra.gmra.mxu1 %vm661_vm2, %v4485_v10 }
 0x11f   : > { %3332 = vmatpush.xpose.msk.msrb.mxu1 %vm661_vm2, %v794_v13 }
 0x122   : > { %v822_v16 = vpop.permute.xlu1 %821 }
 0x123   : > { %v688_v17 = vpop.permute.xlu0 %687  ;;  %3334 = vmatpush.xpose.msk.msra.mxu2 %vm661_vm2, %v822_v16 }
 0x124   : > { %3328 = vmatpush.xpose.msk.msrb.mxu0 %vm661_vm2, %v688_v17 }
 0x127   : > { %3338 = vmatpush.xpose.msk.msrb.mxu2 %vm661_vm2, %v928_v15  ;;  %3329 = vmatmul.msk.f32.vlgmr.msrb.gmra.mxu0 %vm661_vm2, %v4489_v12 }
 0x12a   : > { %v820_v18 = vpop.permute.xlu1 %819 }
 0x12b   : > { %v792_v20 = vpop.permute.xlu0 %791  ;;  %3335 = vmatmul.msk.f32.vlgmr.msra.gmra.mxu2 %vm661_vm2, %v820_v18 }
 0x12c   : > { %3333 = vmatmul.msk.f32.vlgmr.msrb.gmra.mxu1 %vm661_vm2, %v792_v20  ;;  %3344 = vmatpush.xpose.msk.msra.mxu2 %vm661_vm2, %v1062_v19 }
 0x132   : > { %v926_v21 = vpop.permute.xlu1 %925 }
 0x133   : > { %v1060_v22 = vpop.permute.xlu0 %1059  ;;  %3339 = vmatmul.msk.f32.vlgmr.msrb.gmra.mxu2 %vm661_vm2, %v926_v21 }
 0x13a   : > { %v956_v23 = vpop.permute.xlu1 %955 }
 0x13b   : > { %v1090_v24 = vpop.permute.xlu0 %1089  ;;  %3340 = vmatpush.xpose.msk.msra.mxu0 %vm661_vm2, %v956_v23  ;;  %3345 = vmatmul.msk.f32.vlgmr.msra.gmra.mxu2 %vm661_vm2, %v1060_v22 }
 0x13e   : > { %3341 = vmatmul.msk.f32.vlgmr.msra.gmra.mxu0 %vm661_vm2, %v954_v25 }
 0x13f   : > { %3346 = vmatpush.xpose.msk.msrb.mxu0 %vm661_vm2, %v1090_v24 }
 0x142   : > { %v1088_v26 = vpop.permute.xlu1 %1087 }
 0x146   : > { %3347 = vmatmul.msk.f32.vlgmr.msrb.gmra.mxu0 %vm661_vm2, %v1088_v26 }
 0x19b   : > { %v683_v30 = vpop.f32.mrf.mxu1 }
 0x19c   : > { %v713_v33 = vmul.f32 0.35355338, %v683_v30 }
 0x19e   : > { %v715_v34 = vadd.f32 %v713_v33, %v657_v32 }
 0x1a0   : > { %v717_v35 = vsel %vm661_vm2, %v715_v34, -inf }
 0x1a1   : > { %718 = vmax.xlane.f32.xlu2 %v717_v35 }
 0x1a4   : > { %v710_v36 = vpop.f32.mrf.mxu0 }
 0x1a5   : > { %v714_v37 = vmul.f32 0.35355338, %v710_v36 }
 0x1a7   : > { %v716_v38 = vadd.f32 %v714_v37, %v657_v32 }
 0x1a9   : > { %v816_v39 = vpop.f32.mrf.mxu1  ;;  %v720_v40 = vsel %vm661_vm2, %v716_v38, -inf }
 0x1aa   : > { %v847_v41 = vmul.f32 0.35355338, %v816_v39  ;;  %721 = vmax.xlane.f32.xlu0 %v720_v40 }
 0x1ac   : > { %v4523_v42 = vadd.f32 %v847_v41, %v657_v32 }
 0x1ae   : > { %v844_v43 = vpop.f32.mrf.mxu2  ;;  %v851_v44 = vsel %vm661_vm2, %v4523_v42, -inf }
 0x1af   : > { %v848_v45 = vmul.f32 0.35355338, %v844_v43  ;;  %852 = vmax.xlane.f32.xlu1 %v851_v44 }
 0x1b1   : > { %v850_v46 = vadd.f32 %v848_v45, %v657_v32 }
 0x1b3   : > { %v854_v47 = vsel %vm661_vm2, %v850_v46, -inf }
 0x1b4   : > { %855 = vmax.xlane.f32.xlu2 %v854_v47 }
 0x1b6   : > { %v950_v48 = vpop.f32.mrf.mxu2 }
 0x1b7   : > { %v981_v49 = vmul.f32 0.35355338, %v950_v48 }
 0x1b9   : > { %v983_v50 = vadd.f32 %v981_v49, %v657_v32 }
 0x1bb   : > { %v978_v51 = vpop.f32.mrf.mxu0  ;;  %v985_v52 = vsel %vm661_vm2, %v983_v50, -inf }
 0x1bc   : > { %v982_v53 = vmul.f32 0.35355338, %v978_v51  ;;  %986 = vmax.xlane.f32.xlu2 %v985_v52 }
 0x1be   : > { %4215 = vrot.lane.b32.xlu0 %v4214_v54, %s4316_s25  ;;  %v984_v55 = vadd.f32 %v982_v53, %v657_v32  ;;  %v1084_v57 = vpop.f32.mrf.mxu2  ;;  %s4949_s25 = scalar_lea.vmem %s4928_s5, %s4408_s27 }
 0x1bf   : > { %v1115_v58 = vmul.f32 0.35355338, %v1084_v57 }
 0x1c0   : > { %v988_v56 = vsel %vm661_vm2, %v984_v55, -inf }
 0x1c1   : > { %989 = vmax.xlane.f32.xlu1 %v988_v56  ;;  %v1117_v59 = vadd.f32 %v1115_v58, %v657_v32 }
 0x1c3   : > { %v1119_v60 = vsel %vm661_vm2, %v1117_v59, -inf  ;;  %v1112_v61 = vpop.f32.mrf.mxu0 }
 0x1c4   : > { %v1116_v62 = vmul.f32 0.35355338, %v1112_v61 }
 0x1c6   : > { %v4533_v63 = vadd.f32 %v1116_v62, %v657_v32 }
 0x1c8   : > { %v1122_v0 = vsel %vm661_vm2, %v4533_v63, -inf }
 0x1d4   : > { %4210 = vrot.lane.b32.xlu2 %v4214_v54, %s4317_s3 }
 0x1e8   : > { %1120 = vmax.xlane.f32.xlu0 %v1119_v60 }
 0x1fd   : > { %1123 = vmax.xlane.f32.xlu2 %v1122_v0 }
 0x214   : > { %v719_v1 = vpop.xlane.xlu2 %718 }
 0x215   : > { %v723_v2 = vsub.f32 %v715_v34, %v719_v1  ;;  %1007 = vrot.lane.b32.xlu2 %v4485_v10, %s4318_s13 }
 0x217   : > { %v725_v3 = vmul.f32 1.442695, %v723_v2 }
 0x219   : > { %4226 = vpow2.f32 %v725_v3 }
 0x21d   : > { %v722_v4 = vpop.xlane.xlu0 %721 }
 0x21e   : > { %v724_v5 = vsub.f32 %v716_v38, %v722_v4 }
 0x21f   : > { %v4539_v8 = vpop.eup %4226 }
 0x220   : > { %v727_v9 = vmul.f32 1.442695, %v724_v5  ;;  %v729_v11 = vsel %vm661_vm2, %v4539_v8, 0.0 }
 0x221   : > { %730 = vadd.xlane.f32.xlu0 %v729_v11 }
 0x222   : > { %4228 = vpow2.f32 %v727_v9  ;;  %v853_v18 = vpop.xlane.xlu1 %852 }
 0x227   : > { %v856_v13 = vpop.xlane.xlu2 %855 }
 0x228   : > { %v4543_v14 = vpop.eup %4228  ;;  %v858_v15 = vsub.f32 %v850_v46, %v856_v13 }
 0x229   : > { %v732_v16 = vsel %vm661_vm2, %v4543_v14, 0.0 }
 0x22a   : > { %v861_v17 = vmul.f32 1.442695, %v858_v15  ;;  %733 = vadd.xlane.f32.xlu1 %v732_v16 }
 0x22c   : > { %4230 = vpow2.f32 %v861_v17 }
 0x22f   : > { %v987_v19 = vpop.xlane.xlu2 %986 }
 0x230   : > { %v4216_v20 = vpop.permute.xlu0 %4215  ;;  %v991_v26 = vsub.f32 %v983_v50, %v987_v19 }
 0x231   : > { %v4218_v21 = vunpack.i.h.bf16 %v4216_v20  ;;  %v4217_v52 = vunpack.i.l.bf16 %v4216_v20 }
 0x232   : > { %v4547_v22 = vpop.eup %4230  ;;  %v993_v31 = vmul.f32 1.442695, %v991_v26  ;;  %v1227_v26 = vld [vmem:[%s4421_s20 + $0x10] sm:$0xff] }
 0x233   : > { %920 = vmatpush.msra.mxu1 %v4218_v21  ;;  %v866_v23 = vsel %vm661_vm2, %v4547_v22, 0.0 }
 0x234   : > { %v990_v24 = vpop.xlane.xlu1 %989  ;;  %867 = vadd.xlane.f32.xlu1 %v866_v23 }
 0x235   : > { %v992_v25 = vsub.f32 %v984_v55, %v990_v24  ;;  %1141 = vrot.lane.b32.xlu0 %v4485_v10, %s4319_s0  ;;  %v857_v10 = vsub.f32 %v4523_v42, %v853_v18 }
 0x237   : > { %v995_v27 = vmul.f32 1.442695, %v992_v25  ;;  %v4211_v28 = vpop.permute.xlu2 %4210  ;;  %v859_v36 = vmul.f32 1.442695, %v857_v10  ;;  %v1228_v25 = vld [vmem:[%s4421_s20 + $0x18] sm:$0xff] }
 0x238   : > { %v4212_v29 = vunpack.i.l.bf16 %v4211_v28  ;;  %v4213_v30 = vunpack.i.h.bf16 %v4211_v28  ;;  %1251 = vmatpush.msrb.mxu2 %v1228_v25  ;;  %v1225_v28 = vld [vmem:[%s4421_s20] sm:$0xff] }
 0x239   : > { %4232 = vpow2.f32 %v995_v27  ;;  %v1226_v27 = vld [vmem:[%s4421_s20 + $0x8] sm:$0xff] }
 0x23a   : > { %760 = vmatpush.msra.mxu3 %v4212_v29  ;;  %4234 = vpow2.f32 %v993_v31  ;;  %1252 = vmatpush.msrb.mxu2 %v1227_v26 }
 0x23b   : > { %4236 = vpow2.f32 %v859_v36 }
 0x23c   : > { %786 = vmatpush.msrb.mxu3 %v4213_v30  ;;  %1253 = vmatpush.msrb.mxu2 %v1226_v27  ;;  %v4018_v27 = vld [vmem:[%s4439_s1 + $0xc] sm:$0xf] }
 0x23e   : > { %1254 = vmatpush.msrb.mxu2 %v1225_v28  ;;  %v3364_v28 = vld [vmem:[%s4439_s1 + $0x48] sm:$0xf0] }
 0x23f   : > { %v4553_v32 = vpop.eup %4232 }
 0x240   : > { %v1000_v33 = vsel %vm661_vm2, %v4553_v32, 0.0  ;;  %v4235_v34 = vpop.eup %4234 }
 0x241   : > { %1001 = vadd.xlane.f32.xlu1 %v1000_v33  ;;  %v997_v35 = vsel %vm661_vm2, %v4235_v34, 0.0  ;;  %v4237_v37 = vpop.eup %4236 }
 0x242   : > { %v863_v41 = vsel %vm661_vm2, %v4237_v37, 0.0 }
 0x249   : > { %998 = vadd.xlane.f32.xlu1 %v997_v35 }
 0x25b   : > { %v1121_v38 = vpop.xlane.xlu0 %1120 }
 0x25c   : > { %v1125_v39 = vsub.f32 %v1117_v59, %v1121_v38 }
 0x25e   : > { %v1127_v40 = vmul.f32 1.442695, %v1125_v39 }
 0x25f   : > { %864 = vadd.xlane.f32.xlu0 %v863_v41 }
 0x260   : > { %4238 = vpow2.f32 %v1127_v40  ;;  %v4220_v40 = vld [vmem:[%s4948_s28] ss:$0 sm:$0xff] }
 0x266   : > { %v4239_v43 = vpop.eup %4238 }
 0x267   : > { %v1131_v44 = vsel %vm661_vm2, %v4239_v43, 0.0 }
 0x268   : > { %1132 = vadd.xlane.f32.xlu1 %v1131_v44 }
 0x270   : > { %v1124_v45 = vpop.xlane.xlu2 %1123 }
 0x271   : > { %v1126_v46 = vsub.f32 %v4533_v63, %v1124_v45 }
 0x273   : > { %v1129_v47 = vmul.f32 1.442695, %v1126_v46  ;;  %1167 = vrot.lane.b32.xlu0 %v4489_v12, %s4319_s0  ;;  %s4950_s0 = scalar_lea.vmem %s4929_s6, %s4408_s27 }
 0x275   : > { %4240 = vpow2.f32 %v1129_v47 }
 0x278   : > { %v1008_v56 = vpop.permute.xlu2 %1007 }
 0x27b   : > { %v4241_v42 = vpop.eup %4240 }
 0x27c   : > { %v1134_v48 = vsel %vm661_vm2, %v4241_v42, 0.0 }
 0x27d   : > { %1135 = vadd.xlane.f32.xlu2 %v1134_v48 }
 0x281   : > { %1033 = vrot.lane.b32.xlu1 %v4489_v12, %s4318_s13 }
 0x294   : > { %v731_v49 = vpop.xlane.xlu0 %730 }
 0x295   : > { %4242 = vrcp.f32 %v731_v49  ;;  %v4323_v49 = vmov 32.0  }
 0x29b   : > { %v4243_v50 = vpop.eup %4242 }
 0x29c   : > { %v737_v51 = vmul.f32 %v4243_v50, %v4539_v8 }
 0x29d   : > { %v734_v53 = vpop.xlane.xlu1 %733 }
 0x29e   : > { %4244 = vrcp.f32 %v734_v53  ;;  %3330 = vmatmul.msk.f32.vlgmr.msra.gmra.mxu3 %vm661_vm2, %v737_v51 }
 0x29f   : > { %894 = vmatpush.msra.mxu3 %v4217_v52 }
 0x2a4   : > { %v4245_v54 = vpop.eup %4244 }
 0x2a5   : > { %v738_v55 = vmul.f32 %v4245_v54, %v4543_v14 }
 0x2a7   : > { %3331 = vmatmul.msk.f32.vlgmr.msrb.gmra.mxu3 %vm661_vm2, %v738_v55  ;;  %v868_v57 = vpop.xlane.xlu1 %867  ;;  %v1142_v59 = vpop.permute.xlu0 %1141 }
 0x2a8   : > { %1028 = vmatpush.msrb.mxu3 %v1008_v56  ;;  %4246 = vrcp.f32 %v868_v57 }
 0x2ae   : > { %v4247_v12 = vpop.eup %4246 }
 0x2af   : > { %v872_v58 = vmul.f32 %v4247_v12, %v4547_v22 }
 0x2b1   : > { %3337 = vmatmul.msk.f32.vlgmr.msra.gmra.mxu1 %vm661_vm2, %v872_v58 }
 0x2b4   : > { %v1002_v60 = vpop.xlane.xlu1 %1001 }
 0x2bc   : > { %v999_v62 = vpop.xlane.xlu1 %998 }
 0x2d2   : > { %v865_v61 = vpop.xlane.xlu0 %864 }
 0x2d3   : > { %4248 = vrcp.f32 %v865_v61 }
 0x2d4   : > { %4250 = vrcp.f32 %v999_v62 }
 0x2d9   : > { %v4249_v63 = vpop.eup %4248 }
 0x2da   : > { %v871_v0 = vmul.f32 %v4249_v63, %v4237_v37  ;;  %v4251_v2 = vpop.eup %4250 }
 0x2db   : > { %v1133_v1 = vpop.xlane.xlu1 %1132  ;;  %v1005_v3 = vmul.f32 %v4251_v2, %v4235_v34  ;;  %v4041_v2 = vld [vmem:[%s4439_s1 + $0xbc] sm:$0xf0] }
 0x2dc   : > { %3336 = vmatmul.msk.f32.vlgmr.msra.gmra.mxu3 %vm661_vm2, %v871_v0  ;;  %4252 = vrcp.f32 %v1133_v1  ;;  %v3418_v1 = vld [vmem:[%s4439_s1 + $0x80] sm:$0xf] }
 0x2dd   : > { %1162 = vmatpush.msra.mxu3 %v1142_v59  ;;  %4254 = vrcp.f32 %v1002_v60 }
 0x2e2   : > { %v4253_v4 = vpop.eup %4252 }
 0x2e3   : > { %v1139_v5 = vmul.f32 %v4253_v4, %v4239_v43  ;;  %v4255_v8 = vpop.eup %4254  ;;  %v3419_v4 = vor.u32 %v4041_v2, %v3418_v1 }
 0x2e4   : > { %3342 = vmatmul.msk.f32.vlgmr.msrb.gmra.mxu3 %vm661_vm2, %v1005_v3  ;;  %v1006_v11 = vmul.f32 %v4255_v8, %v4553_v32  ;;  %v4033_v3 = vld [vmem:[%s4439_s1 + $0x84] sm:$0xf]  ;;  %v3426_v8 = vld [vmem:[%s4439_s1 + $0x88] sm:$0xf] }
 0x2e5   : > { %v1168_v14 = vpop.permute.xlu0 %1167  ;;  %1565 = vmatpush.bf16.msra.mxu0 %v3419_v4  ;;  %v4221_v4 = vld [vmem:[%s4949_s25] ss:$0 sm:$0xff] }
 0x2ec   : > { %3348 = vmatmul.msk.f32.vlgmr.msra.gmra.mxu3 %vm661_vm2, %v1139_v5  ;;  %v3420_v5 = vld [vmem:[%s4439_s1 + $0xc0] sm:$0xf0] }
 0x2f0   : > { %v1136_v9 = vpop.xlane.xlu2 %1135 }
 0x2f1   : > { %4256 = vrcp.f32 %v1136_v9  ;;  %v4042_v9 = vld [vmem:[%s4439_s1 + $0xc4] sm:$0xf0] }
 0x2f2   : > { %4258 = vrcp.f32 %v4323_v49 }
 0x2f3   : > { %v1034_v13 = vpop.permute.xlu1 %1033 }
 0x2f4   : > { %1054 = vmatpush.msrb.mxu1 %v1034_v13  ;;  %v3423_v13 = vor.u32 %v4033_v3, %v3420_v5 }
 0x2f5   : > { %3343 = vmatmul.msk.f32.vlgmr.msrb.gmra.mxu1 %vm661_vm2, %v1006_v11 }
 0x2f6   : > { %1188 = vmatpush.msra.mxu1 %v1168_v14  ;;  %v3427_v14 = vor.u32 %v4042_v9, %v3426_v8  ;;  %1579 = vmatpush.bf16.msrb.mxu3 %v3423_v13 }
 0x2f7   : > { %v4257_v15 = vpop.eup %4256 }
 0x2f8   : > { %v1140_v16 = vmul.f32 %v4257_v15, %v4241_v42  ;;  %v4259_v50 = vpop.eup %4258  ;;  %v4034_v15 = vld [vmem:[%s4439_s1 + $0x8c] sm:$0xf]  ;;  %1593 = vmatpush.bf16.msrb.mxu1 %v3427_v14 }
 0x2f9   : > { %v1271_v51 = vmul.f32 32.0, %v4259_v50  ;;  %vm1275_vm6 = vweird.f32 %v4259_v50 }
 0x2fb   : > { %v1272_v52 = vsub.f32 1.0, %v1271_v51  ;;  %v3372_v51 = vld [vmem:[%s4439_s1 + $0x50] sm:$0xf0] }
 0x2fd   : > { %3349 = vmatmul.msk.f32.vlgmr.msra.gmra.mxu1 %vm661_vm2, %v1140_v16  ;;  %v1273_v53 = vmul.f32 %v4259_v50, %v1272_v52  ;;  %v3428_v16 = vld [vmem:[%s4439_s1 + $0xc8] sm:$0xf0]  ;;  %v3378_v52 = vld [vmem:[%s4439_s1 + $0x18] sm:$0xf] }
 0x2ff   : > { %v1274_v54 = vadd.f32 %v4259_v50, %v1273_v53 }
 0x321   : > { %v762_v17 = vpop.f32.mrf.mxu3 }
 0x32a   : > { %v788_v18 = vpop.f32.mrf.mxu3 }
 0x32e   : > { %v922_v21 = vpop.f32.mrf.mxu1 }
 0x35f   : > { %v896_v19 = vpop.f32.mrf.mxu3 }
 0x360   : > { %1195 = vrot.lane.b32.xlu0 %v896_v19, %s4320_s17  ;;  %v4025_v19 = vld [vmem:[%s4439_s1 + $0x3c] sm:$0xf0] }
 0x367   : > { %v1030_v20 = vpop.f32.mrf.mxu3 }
 0x368   : > { %1203 = vrot.lane.b32.xlu0 %v1030_v20, %s4321_s29  ;;  %v4017_v20 = vld [vmem:[%s4439_s1 + $0x4] sm:$0xf] }
 0x36f   : > { %v1164_v22 = vpop.f32.mrf.mxu3 }
 0x370   : > { %1197 = vrot.lane.b32.xlu0 %v922_v21, %s4320_s17  ;;  %1211 = vrot.lane.b32.xlu1 %v1164_v22, %s4322_s15  ;;  %v3356_v22 = vld [vmem:[%s4439_s1 + $0x40] sm:$0xf0] }
 0x371   : > { %v3359_v25 = vor.u32 %v4017_v20, %v3356_v22  ;;  %v4046_v22 = vld [vmem:[%s4439_s1 + $0xe4] sm:$0xf0] }
 0x372   : > { %v1056_v23 = vpop.f32.mrf.mxu1 }
 0x373   : > { %1580 = vmatpush.bf16.msrb.mxu3 %v3359_v25 }
 0x378   : > { %1205 = vrot.lane.b32.xlu1 %v1056_v23, %s4321_s29  ;;  %v3362_v23 = vld [vmem:[%s4439_s1 + $0x8] sm:$0xf] }
 0x37a   : > { %v1190_v24 = vpop.f32.mrf.mxu1 }
 0x37b   : > { %1213 = vrot.lane.b32.xlu0 %v1190_v24, %s4322_s15  ;;  %v4026_v24 = vld [vmem:[%s4439_s1 + $0x44] sm:$0xf0] }
 0x37c   : > { %v3363_v26 = vor.u32 %v4026_v24, %v3362_v23  ;;  %v4038_v23 = vld [vmem:[%s4439_s1 + $0xac] sm:$0xf] }
 0x37e   : > { %1594 = vmatpush.bf16.msrb.mxu1 %v3363_v26 }
 0x3d2   : > { %v1196_v29 = vpop.permute.xlu0 %1195 }
 0x3d3   : > { %v1217_v31 = vsel %vm661_vm2, %v762_v17, %v1196_v29  ;;  %v3431_v17 = vor.u32 %v4034_v15, %v3428_v16  ;;  %v3367_v29 = vor.u32 %v4018_v27, %v3364_v28  ;;  %v3450_v16 = vld [vmem:[%s4439_s1 + $0xa0] sm:$0xf] }
 0x3d4   : > { %v3386_v27 = vld [vmem:[%s4439_s1 + $0x20] sm:$0xf] }
 0x3d5   : > { %1607 = vmatpush.bf16.msra.mxu2 %v3431_v17  ;;  %v4037_v17 = vld [vmem:[%s4439_s1 + $0xa4] sm:$0xf]  ;;  %v4029_v28 = vld [vmem:[%s4439_s1 + $0x5c] sm:$0xf0] }
 0x3d9   : > { %1608 = vmatpush.bf16.msra.mxu2 %v3367_v29 }
 0x3da   : > { %v1204_v30 = vpop.permute.xlu0 %1203 }
 0x3db   : > { %v1220_v32 = vsel %vm1219_vm4, %v1217_v31, %v1204_v30 }
 0x3e2   : > { %v1212_v33 = vpop.permute.xlu1 %1211  ;;  %v1198_v35 = vpop.permute.xlu0 %1197 }
 0x3e3   : > { %v1223_v34 = vsel %vm1222_vm5, %v1220_v32, %v1212_v33  ;;  %v1218_v10 = vsel %vm661_vm2, %v788_v18, %v1198_v35  ;;  %v3354_v18 = vld [vmem:[%s4439_s1] sm:$0xf]  ;;  %v3434_v32 = vld [vmem:[%s4439_s1 + $0x90] sm:$0xf] }
 0x3e4   : > { %3350 = vmatmul.msk.f32.vlgmr.msrb.gmra.mxu2 %vm622_vm1, %v1223_v34  ;;  %v3355_v21 = vor.u32 %v4025_v19, %v3354_v18  ;;  %v4043_v33 = vld [vmem:[%s4439_s1 + $0xcc] sm:$0xf0]  ;;  %v4035_v34 = vld [vmem:[%s4439_s1 + $0x94] sm:$0xf]  ;;  %v3452_v18 = vld [vmem:[%s4439_s1 + $0xe0] sm:$0xf0] }
 0x3e5   : > { %v3458_v19 = vld [vmem:[%s4439_s1 + $0xa8] sm:$0xf]  ;;  %v3455_v26 = vor.u32 %v4037_v17, %v3452_v18  ;;  %v4061_v17 = vld [vmem:[%s4451_s24 + $0x60] sm:$0xff] }
 0x3e6   : > { %1566 = vmatpush.bf16.msra.mxu0 %v3355_v21  ;;  %v3459_v29 = vor.u32 %v4046_v22, %v3458_v19  ;;  %v4077_v18 = vld [vmem:[%s4451_s24 + $0xe0] sm:$0xff]  ;;  %v4052_v19 = vld [vmem:[%s4451_s24 + $0x18] sm:$0xff] }
 0x3e7   : > { %v4068_v22 = vld [vmem:[%s4451_s24 + $0x98] sm:$0xff] }
 0x3ea   : > { %v1206_v36 = vpop.permute.xlu1 %1205 }
 0x3eb   : > { %v1221_v37 = vsel %vm1219_vm4, %v1218_v10, %v1206_v36  ;;  %v3435_v36 = vor.u32 %v4043_v33, %v3434_v32  ;;  %v3388_v32 = vld [vmem:[%s4439_s1 + $0x60] sm:$0xf0]  ;;  %v3394_v33 = vld [vmem:[%s4439_s1 + $0x28] sm:$0xf] }
 0x3ed   : > { %v1214_v38 = vpop.permute.xlu0 %1213  ;;  %1621 = vmatpush.bf16.msrb.mxu0 %v3435_v36  ;;  %v3387_v36 = vor.u32 %v4029_v28, %v3386_v27  ;;  %v4059_v27 = vld [vmem:[%s4451_s24 + $0x50] sm:$0xff] }
 0x3ee   : > { %v1224_v39 = vsel %vm1222_vm5, %v1221_v37, %v1214_v38  ;;  %v3436_v37 = vld [vmem:[%s4439_s1 + $0xd0] sm:$0xf0]  ;;  %v3442_v38 = vld [vmem:[%s4439_s1 + $0x98] sm:$0xf] }
 0x3ef   : > { %3351 = vmatmul.msk.f32.gmra.mxu2 %vm622_vm1, %v1224_v39  ;;  %v4044_v39 = vld [vmem:[%s4439_s1 + $0xd4] sm:$0xf0]  ;;  %v4075_v28 = vld [vmem:[%s4451_s24 + $0xd0] sm:$0xff] }
 0x467   : > { %v1256_v41 = vpop.f32.mrf.mxu2 }
 0x468   : > { %v1257_v43 = vadd.f32 %v4220_v40, %v1256_v41  ;;  %v3443_v41 = vor.u32 %v4044_v39, %v3442_v38 }
 0x46a   : > { %v1262_v44 = vadd.f32 %v1257_v43, %v4472_v6  ;;  %v4598_v6 = vsel %vm1275_vm6, %v4259_v50, %v1274_v54  ;;  %v4036_v43 = vld [vmem:[%s4439_s1 + $0x9c] sm:$0xf]  ;;  %1649 = vmatpush.bf16.msra.mxu1 %v3443_v41  ;;  %v4019_v50 = vld [vmem:[%s4439_s1 + $0x14] sm:$0xf]  ;;  %v4047_v41 = vld [vmem:[%s4439_s1 + $0xec] sm:$0xf0] }
 0x46b   : > { %v3375_v54 = vor.u32 %v4019_v50, %v3372_v51  ;;  %v3402_v50 = vld [vmem:[%s4439_s1 + $0x30] sm:$0xf] }
 0x46c   : > { %v1264_v45 = vsel %vm622_vm1, %v1262_v44, 0.0  ;;  %v4031_v51 = vld [vmem:[%s4439_s1 + $0x6c] sm:$0xf0] }
 0x46d   : > { %1265 = vadd.xlane.f32.xlu2 %v1264_v45 }
 0x472   : > { %v1259_v46 = vpop.f32.mrf.mxu2 }
 0x473   : > { %v1260_v47 = vadd.f32 %v4220_v40, %v1259_v46  ;;  %v3439_v40 = vor.u32 %v4035_v34, %v3436_v37  ;;  %v4030_v34 = vld [vmem:[%s4439_s1 + $0x64] sm:$0xf0] }
 0x474   : > { %v3395_v38 = vor.u32 %v4030_v34, %v3394_v33  ;;  %v4065_v33 = vld [vmem:[%s4451_s24 + $0x80] sm:$0xff]  ;;  %v4088_v34 = vld [vmem:[%s4451_s24 + $0x138] sm:$0xff] }
 0x475   : > { %v1263_v42 = vadd.f32 %v1260_v47, %v4476_v7  ;;  %1635 = vmatpush.bf16.msra.mxu3 %v3439_v40  ;;  %v3466_v40 = vld [vmem:[%s4439_s1 + $0xb0] sm:$0xf] }
 0x477   : > { %v1267_v48 = vsel %vm622_vm1, %v1263_v42, 0.0 }
 0x478   : > { %1268 = vadd.xlane.f32.xlu1 %v1267_v48  ;;  %v4027_v48 = vld [vmem:[%s4439_s1 + $0x4c] sm:$0xf0] }
 0x479   : > { %1636 = vmatpush.bf16.msra.mxu3 %v3375_v54  ;;  %v4023_v54 = vld [vmem:[%s4439_s1 + $0x34] sm:$0xf] }
 0x4e0   : > { %v1266_v55 = vpop.xlane.xlu2 %1265 }
 0x4e1   : > { %v1277_v56 = vmul.f32 %v4598_v6, %v1266_v55  ;;  %v4028_v55 = vld [vmem:[%s4439_s1 + $0x54] sm:$0xf0] }
 0x4e3   : > { %v4601_v7 = vsub.f32 %v1262_v44, %v1277_v56  ;;  %v3444_v44 = vld [vmem:[%s4439_s1 + $0xd8] sm:$0xf0] }
 0x4e4   : > { %v3447_v47 = vor.u32 %v4036_v43, %v3444_v44  ;;  %v4020_v56 = vld [vmem:[%s4439_s1 + $0x1c] sm:$0xf]  ;;  %v4039_v43 = vld [vmem:[%s4439_s1 + $0xb4] sm:$0xf] }
 0x4e5   : > { %v1281_v57 = vmul.f32 %v4601_v7, %v4601_v7  ;;  %v3468_v44 = vld [vmem:[%s4439_s1 + $0xf0] sm:$0xf0] }
 0x4e6   : > { %1663 = vmatpush.bf16.msrb.mxu2 %v3447_v47  ;;  %v4040_v47 = vld [vmem:[%s4439_s1 + $0xbc] sm:$0xf] }
 0x4e7   : > { %v1283_v12 = vsel %vm622_vm1, %v1281_v57, 0.0  ;;  %v3379_v57 = vor.u32 %v4028_v55, %v3378_v52  ;;  %v3404_v55 = vld [vmem:[%s4439_s1 + $0x70] sm:$0xf0] }
 0x4e8   : > { %1284 = vadd.xlane.f32.xlu0 %v1283_v12  ;;  %v3380_v12 = vld [vmem:[%s4439_s1 + $0x58] sm:$0xf0] }
 0x4e9   : > { %1650 = vmatpush.bf16.msra.mxu1 %v3379_v57  ;;  %v4032_v57 = vld [vmem:[%s4439_s1 + $0x74] sm:$0xf0] }
 0x4eb   : > { %v1269_v58 = vpop.xlane.xlu1 %1268 }
 0x4ec   : > { %v1278_v59 = vmul.f32 %v4598_v6, %v1269_v58  ;;  %v3383_v58 = vor.u32 %v4020_v56, %v3380_v12  ;;  %v3410_v56 = vld [vmem:[%s4439_s1 + $0x38] sm:$0xf]  ;;  %v4024_v12 = vld [vmem:[%s4439_s1 + $0x3c] sm:$0xf] }
 0x4ee   : > { %v4607_v60 = vsub.f32 %v1263_v42, %v1278_v59  ;;  %v3370_v42 = vld [vmem:[%s4439_s1 + $0x10] sm:$0xf]  ;;  %1664 = vmatpush.bf16.msrb.mxu2 %v3383_v58  ;;  %v3412_v58 = vld [vmem:[%s4439_s1 + $0x78] sm:$0xf0] }
 0x4ef   : > { %v3371_v49 = vor.u32 %v4027_v48, %v3370_v42  ;;  %v3476_v42 = vld [vmem:[%s4439_s1 + $0xf8] sm:$0xf0]  ;;  %v3467_v48 = vor.u32 %v4047_v41, %v3466_v40  ;;  %v4103_v40 = vld [vmem:[%s4451_s24 + $0x1b0] sm:$0xff] }
 0x4f0   : > { %v1282_v61 = vmul.f32 %v4607_v60, %v4607_v60  ;;  %v4095_v41 = vld [vmem:[%s4451_s24 + $0x170] sm:$0xff] }
 0x4f1   : > { %1622 = vmatpush.bf16.msrb.mxu0 %v3371_v49  ;;  %v3471_v49 = vor.u32 %v4039_v43, %v3468_v44  ;;  %v4111_v43 = vld [vmem:[%s4451_s24 + $0x1f0] sm:$0xff]  ;;  %v4086_v44 = vld [vmem:[%s4451_s24 + $0x128] sm:$0xff] }
 0x4f2   : > { %v1286_v62 = vsel %vm622_vm1, %v1282_v61, 0.0 }
 0x4f3   : > { %1287 = vadd.xlane.f32.xlu2 %v1286_v62 }
 0x55b   : > { %v1285_v63 = vpop.xlane.xlu0 %1284 }
 0x55c   : > { %v1289_v0 = vmul.f32 %v1285_v63, %v4598_v6 }
 0x55e   : > { %v4619_v11 = vadd.f32 1e-05, %v1289_v0 }
 0x560   : > { %4260 = vrsqrt.f32 %v4619_v11  ;;  %vm1299_vm8 = vweird.f32 %v4619_v11 }
 0x566   : > { %v4261_v30 = vpop.eup %4260  ;;  %v1288_v31 = vpop.xlane.xlu2 %1287 }
 0x567   : > { %v1294_v35 = vmul.f32 %v4261_v30, %v4619_v11  ;;  %v1290_v10 = vmul.f32 %v1288_v31, %v4598_v6  ;;  %vm1300_vm7 = vweird.f32 %v4261_v30  ;;  %v4222_v11 = vld [vmem:[%s4950_s0] ss:$0 sm:$0xff]  ;;  %v4021_v31 = vld [vmem:[%s4439_s1 + $0x24] sm:$0xf] }
 0x568   : > { %vm1301_vm9 = vmor %vm1299_vm8, %vm1300_vm7  ;;  %v3391_v37 = vor.u32 %v4021_v31, %v3388_v32  ;;  %v4074_v31 = vld [vmem:[%s4451_s24 + $0xc8] sm:$0xff]  ;;  %v4049_v32 = vld [vmem:[%s4451_s24] sm:$0xff] }
 0x569   : > { %v1295_v45 = vmul.f32 %v4261_v30, %v1294_v35  ;;  %v1292_v46 = vadd.f32 1e-05, %v1290_v10  ;;  %v4022_v35 = vld [vmem:[%s4439_s1 + $0x2c] sm:$0xf] }
 0x56a   : > { %v3396_v10 = vld [vmem:[%s4439_s1 + $0x68] sm:$0xf0] }
 0x56b   : > { %v1296_v53 = vmul.f32 0.5, %v1295_v45  ;;  %4262 = vrsqrt.f32 %v1292_v46  ;;  %vm1309_vm11 = vweird.f32 %v1292_v46  ;;  %v3399_v39 = vor.u32 %v4022_v35, %v3396_v10  ;;  %v3474_v45 = vld [vmem:[%s4439_s1 + $0xb8] sm:$0xf]  ;;  %v4057_v10 = vld [vmem:[%s4451_s24 + $0x40] sm:$0xff] }
 0x56c   : > { %v4104_v35 = vld [vmem:[%s4451_s24 + $0x1b8] sm:$0xff] }
 0x56d   : > { %v1297_v59 = vsub.f32 1.5, %v1296_v53  ;;  %v3479_v53 = vor.u32 %v4040_v47, %v3476_v42  ;;  %v4101_v47 = vld [vmem:[%s4451_s24 + $0x1a0] sm:$0xff]  ;;  %v4094_v42 = vld [vmem:[%s4451_s24 + $0x168] sm:$0xff] }
 0x56f   : > { %v1298_v62 = vmul.f32 %v4261_v30, %v1297_v59  ;;  %v3403_v59 = vor.u32 %v4031_v51, %v3402_v50  ;;  %v4100_v50 = vld [vmem:[%s4451_s24 + $0x198] sm:$0xff]  ;;  %v4093_v51 = vld [vmem:[%s4451_s24 + $0x160] sm:$0xff] }
 0x571   : > { %v4263_v61 = vpop.eup %4262  ;;  %v1302_v1 = vsel %vm1301_vm9, %v4261_v30, %v1298_v62  ;;  %v3411_v62 = vor.u32 %v4032_v57, %v3410_v56  ;;  %v4108_v56 = vld [vmem:[%s4451_s24 + $0x1d8] sm:$0xff]  ;;  %v4082_v57 = vld [vmem:[%s4451_s24 + $0x108] sm:$0xff] }
 0x572   : > { %v1304_v63 = vmul.f32 %v4263_v61, %v1292_v46  ;;  %vm1310_vm10 = vweird.f32 %v4263_v61  ;;  %v1313_v5 = vmul.f32 %v1302_v1, %v4601_v7  ;;  %v4045_v7 = vld [vmem:[%s4439_s1 + $0xdc] sm:$0xf0]  ;;  %v4048_v46 = vld [vmem:[%s4439_s1 + $0xf4] sm:$0xf0] }
 0x573   : > { %vm1311_vm12 = vmor %vm1309_vm11, %vm1310_vm10  ;;  %v3451_v25 = vor.u32 %v4045_v7, %v3450_v16  ;;  %v3475_v52 = vor.u32 %v4048_v46, %v3474_v45  ;;  %v4072_v1 = vld [vmem:[%s4451_s24 + $0xb8] sm:$0xff]  ;;  %v4053_v16 = vld [vmem:[%s4451_s24 + $0x20] sm:$0xff] }
 0x574   : > { %v1305_v0 = vmul.f32 %v4263_v61, %v1304_v63  ;;  %v1319_v13 = vmul.f32 %v4221_v4, %v1313_v5  ;;  %v3415_v63 = vor.u32 %v4024_v12, %v3412_v58  ;;  %v4071_v5 = vld [vmem:[%s4451_s24 + $0xb0] sm:$0xff]  ;;  %v4069_v7 = vld [vmem:[%s4451_s24 + $0xa0] sm:$0xff]  ;;  %v4102_v45 = vld [vmem:[%s4451_s24 + $0x1a8] sm:$0xff] }
 0x575   : > { %v4085_v46 = vld [vmem:[%s4451_s24 + $0x120] sm:$0xff]  ;;  %v4098_v12 = vld [vmem:[%s4451_s24 + $0x188] sm:$0xff]  ;;  %v4091_v58 = vld [vmem:[%s4451_s24 + $0x150] sm:$0xff] }
 0x576   : > { %v1306_v2 = vmul.f32 0.5, %v1305_v0  ;;  %v4668_v20 = vadd.f32 %v4222_v11, %v1319_v13  ;;  %v4056_v0 = vld [vmem:[%s4451_s24 + $0x38] sm:$0xff]  ;;  %v4070_v13 = vld [vmem:[%s4451_s24 + $0xa8] sm:$0xff] }
 0x578   : > { %v1307_v3 = vsub.f32 1.5, %v1306_v2  ;;  %v4064_v2 = vld [vmem:[%s4451_s24 + $0x78] sm:$0xff] }
 0x57a   : > { %v1308_v8 = vmul.f32 %v4263_v61, %v1307_v3  ;;  %v4080_v3 = vld [vmem:[%s4451_s24 + $0xf8] sm:$0xff] }
 0x57c   : > { %v1312_v9 = vsel %vm1311_vm12, %v4263_v61, %v1308_v8  ;;  %v3407_v61 = vor.u32 %v4023_v54, %v3404_v55  ;;  %v4063_v8 = vld [vmem:[%s4451_s24 + $0x70] sm:$0xff]  ;;  %v4092_v55 = vld [vmem:[%s4451_s24 + $0x158] sm:$0xff] }
 0x57d   : > { %v1314_v14 = vmul.f32 %v1312_v9, %v4607_v60  ;;  %v3460_v60 = vld [vmem:[%s4439_s1 + $0xe8] sm:$0xf0]  ;;  %v4079_v9 = vld [vmem:[%s4451_s24 + $0xf0] sm:$0xff] }
 0x57e   : > { %v3463_v30 = vor.u32 %v4038_v23, %v3460_v60  ;;  %v4060_v23 = vld [vmem:[%s4451_s24 + $0x58] sm:$0xff]  ;;  %v4099_v54 = vld [vmem:[%s4451_s24 + $0x190] sm:$0xff] }
 0x57f   : > { %v1320_v15 = vmul.f32 %v4221_v4, %v1314_v14  ;;  %v4055_v4 = vld [vmem:[%s4451_s24 + $0x30] sm:$0xff]  ;;  %v4062_v14 = vld [vmem:[%s4451_s24 + $0x68] sm:$0xff]  ;;  %v4076_v60 = vld [vmem:[%s4451_s24 + $0xd8] sm:$0xff] }
 0x581   : > { %v4670_v21 = vadd.f32 %v4222_v11, %v1320_v15  ;;  %v4054_v11 = vld [vmem:[%s4451_s24 + $0x28] sm:$0xff] }
 0x582   : > { %v4078_v15 = vld [vmem:[%s4451_s24 + $0xe8] sm:$0xff] }
 0x583   : > { %v4677_v24 = vpack.c.bf16 %v4670_v21, %v4668_v20 }
 0x585   : > { %3480 = vmatmul.msk.bf16.vlgmr.msra.gmra.mxu0 %vm622_vm1, %v4677_v24  ;;  %3481 = vmatmul.msk.bf16.vlgmr.msrb.gmra.mxu3 %vm622_vm1, %v4677_v24 }
 0x586   : > { %3482 = vmatmul.msk.bf16.vlgmr.msrb.gmra.mxu1 %vm622_vm1, %v4677_v24  ;;  %3483 = vmatmul.msk.bf16.vlgmr.msra.gmra.mxu2 %vm622_vm1, %v4677_v24 }
 0x587   : > { %1677 = vmatpush.bf16.msra.mxu0 %v3451_v25  ;;  %1691 = vmatpush.bf16.msrb.mxu3 %v3455_v26  ;;  %v4051_v25 = vld [vmem:[%s4451_s24 + $0x10] sm:$0xff] }
 0x588   : > { %1705 = vmatpush.bf16.msrb.mxu1 %v3459_v29  ;;  %1719 = vmatpush.bf16.msra.mxu2 %v3463_v30  ;;  %v4067_v26 = vld [vmem:[%s4451_s24 + $0x90] sm:$0xff]  ;;  %v4050_v29 = vld [vmem:[%s4451_s24 + $0x8] sm:$0xff] }
 0x589   : > { %v4058_v30 = vld [vmem:[%s4451_s24 + $0x48] sm:$0xff] }
 0x58b   : > { %1678 = vmatpush.bf16.msra.mxu0 %v3387_v36  ;;  %1692 = vmatpush.bf16.msrb.mxu3 %v3391_v37  ;;  %v4073_v36 = vld [vmem:[%s4451_s24 + $0xc0] sm:$0xff]  ;;  %v4096_v37 = vld [vmem:[%s4451_s24 + $0x178] sm:$0xff] }
 0x58c   : > { %1706 = vmatpush.bf16.msrb.mxu1 %v3395_v38  ;;  %1720 = vmatpush.bf16.msra.mxu2 %v3399_v39  ;;  %v4112_v38 = vld [vmem:[%s4451_s24 + $0x1f8] sm:$0xff]  ;;  %v4087_v39 = vld [vmem:[%s4451_s24 + $0x130] sm:$0xff] }
 0x595   : > { %3484 = vmatmul.msk.bf16.vlgmr.msrb.gmra.mxu0 %vm622_vm1, %v4677_v24  ;;  %3485 = vmatmul.msk.bf16.vlgmr.msra.gmra.mxu3 %vm622_vm1, %v4677_v24 }
 0x596   : > { %3486 = vmatmul.msk.bf16.vlgmr.msra.gmra.mxu1 %vm622_vm1, %v4677_v24  ;;  %3487 = vmatmul.msk.bf16.vlgmr.msrb.gmra.mxu2 %vm622_vm1, %v4677_v24 }
 0x597   : > { %1733 = vmatpush.bf16.msrb.mxu0 %v3467_v48  ;;  %1747 = vmatpush.bf16.msra.mxu3 %v3471_v49  ;;  %v4110_v48 = vld [vmem:[%s4451_s24 + $0x1e8] sm:$0xff]  ;;  %v4084_v49 = vld [vmem:[%s4451_s24 + $0x118] sm:$0xff] }
 0x598   : > { %1761 = vmatpush.bf16.msra.mxu1 %v3475_v52  ;;  %1775 = vmatpush.bf16.msrb.mxu2 %v3479_v53  ;;  %v4109_v52 = vld [vmem:[%s4451_s24 + $0x1e0] sm:$0xff]  ;;  %v4083_v53 = vld [vmem:[%s4451_s24 + $0x110] sm:$0xff] }
 0x59b   : > { %1734 = vmatpush.bf16.msrb.mxu0 %v3403_v59  ;;  %1748 = vmatpush.bf16.msra.mxu3 %v3407_v61  ;;  %v4107_v59 = vld [vmem:[%s4451_s24 + $0x1d0] sm:$0xff]  ;;  %v4081_v61 = vld [vmem:[%s4451_s24 + $0x100] sm:$0xff] }
 0x59c   : > { %1762 = vmatpush.bf16.msra.mxu1 %v3411_v62  ;;  %1776 = vmatpush.bf16.msrb.mxu2 %v3415_v63  ;;  %v4097_v62 = vld [vmem:[%s4451_s24 + $0x180] sm:$0xff]  ;;  %v4090_v63 = vld [vmem:[%s4451_s24 + $0x148] sm:$0xff] }
 0x5a5   : > { %3488 = vmatmul.msk.bf16.vlgmr.msra.gmra.mxu0 %vm622_vm1, %v4677_v24  ;;  %3489 = vmatmul.msk.bf16.vlgmr.msrb.gmra.mxu3 %vm622_vm1, %v4677_v24 }
 0x5a6   : > { %3490 = vmatmul.msk.bf16.vlgmr.msrb.gmra.mxu1 %vm622_vm1, %v4677_v24  ;;  %3491 = vmatmul.msk.bf16.vlgmr.msra.gmra.mxu2 %vm622_vm1, %v4677_v24 }
 0x5a7   : > { %2859 = vmatpush.bf16.msra.mxu0 %v4056_v0  ;;  %2887 = vmatpush.bf16.msrb.mxu1 %v4072_v1  ;;  %v4106_v0 = vld [vmem:[%s4451_s24 + $0x1c8] sm:$0xff]  ;;  %v4089_v1 = vld [vmem:[%s4451_s24 + $0x140] sm:$0xff] }
 0x5a8   : > { %2873 = vmatpush.bf16.msrb.mxu3 %v4064_v2  ;;  %2901 = vmatpush.bf16.msra.mxu2 %v4080_v3  ;;  %v4105_v2 = vld [vmem:[%s4451_s24 + $0x1c0] sm:$0xff] }
 0x5a9   : > { %v4800_v3 = vld [vmem:[%s4445_s21] sm:$0xff] }
 0x5ab   : > { %2860 = vmatpush.bf16.msra.mxu0 %v4055_v4  ;;  %2888 = vmatpush.bf16.msrb.mxu1 %v4071_v5 }
 0x5ac   : > { %2874 = vmatpush.bf16.msrb.mxu3 %v4063_v8  ;;  %2902 = vmatpush.bf16.msra.mxu2 %v4079_v9  ;;  %v1364_v8 = vperm.slane %v4800_v3, 0  ;;  %v1366_v9 = vperm.slane %v4800_v3, 2 }
 0x5af   : > { %2861 = vmatpush.bf16.msra.mxu0 %v4054_v11  ;;  %2889 = vmatpush.bf16.msrb.mxu1 %v4070_v13 }
 0x5b0   : > { %2875 = vmatpush.bf16.msrb.mxu3 %v4062_v14  ;;  %2903 = vmatpush.bf16.msra.mxu2 %v4078_v15 }
 0x5b3   : > { %2862 = vmatpush.bf16.msra.mxu0 %v4053_v16  ;;  %2890 = vmatpush.bf16.msrb.mxu1 %v4069_v7  ;;  %v1365_v7 = vperm.slane %v4800_v3, 1 }
 0x5b4   : > { %2876 = vmatpush.bf16.msrb.mxu3 %v4061_v17  ;;  %2904 = vmatpush.bf16.msra.mxu2 %v4077_v18 }
 0x5b5   : > { %3492 = vmatmul.msk.bf16.vlgmr.msrb.gmra.mxu0 %vm622_vm1, %v4677_v24  ;;  %3493 = vmatmul.msk.bf16.vlgmr.msra.gmra.mxu3 %vm622_vm1, %v4677_v24 }
 0x5b6   : > { %3494 = vmatmul.msk.bf16.vlgmr.msra.gmra.mxu1 %vm622_vm1, %v4677_v24  ;;  %3495 = vmatmul.msk.bf16.vlgmr.msrb.gmra.mxu2 %vm622_vm1, %v4677_v24  ;;  %v4066_v24 = vld [vmem:[%s4451_s24 + $0x88] sm:$0xff] }
 0x5b7   : > { %2863 = vmatpush.bf16.msra.mxu0 %v4052_v19  ;;  %2891 = vmatpush.bf16.msrb.mxu1 %v4068_v22  ;;  %v1367_v19 = vperm.slane %v4800_v3, 3 }
 0x5b8   : > { %2877 = vmatpush.bf16.msrb.mxu3 %v4060_v23  ;;  %2905 = vmatpush.bf16.msra.mxu2 %v4076_v60 }
 0x5bb   : > { %2864 = vmatpush.bf16.msra.mxu0 %v4051_v25  ;;  %2892 = vmatpush.bf16.msrb.mxu1 %v4067_v26 }
 0x5bc   : > { %2878 = vmatpush.bf16.msrb.mxu3 %v4059_v27  ;;  %2906 = vmatpush.bf16.msra.mxu2 %v4075_v28  ;;  %v4120_v27 = vld [vmem:[%s4451_s24 + $0x238] sm:$0xff] }
 0x5bf   : > { %2865 = vmatpush.bf16.msra.mxu0 %v4050_v29  ;;  %2893 = vmatpush.bf16.msrb.mxu1 %v4066_v24  ;;  %v4136_v24 = vld [vmem:[%s4451_s24 + $0x2b8] sm:$0xff] }
 0x5c0   : > { %2879 = vmatpush.bf16.msrb.mxu3 %v4058_v30  ;;  %2907 = vmatpush.bf16.msra.mxu2 %v4074_v31 }
 0x5c3   : > { %2866 = vmatpush.bf16.msra.mxu0 %v4049_v32  ;;  %2894 = vmatpush.bf16.msrb.mxu1 %v4065_v33 }
 0x5c4   : > { %2880 = vmatpush.bf16.msrb.mxu3 %v4057_v10  ;;  %2908 = vmatpush.bf16.msra.mxu2 %v4073_v36  ;;  %v4119_v36 = vld [vmem:[%s4451_s24 + $0x230] sm:$0xff] }
 0x5c7   : > { %2915 = vmatpush.bf16.msrb.mxu0 %v4088_v34  ;;  %2943 = vmatpush.bf16.msra.mxu1 %v4104_v35 }
 0x5c8   : > { %2929 = vmatpush.bf16.msra.mxu3 %v4096_v37  ;;  %2957 = vmatpush.bf16.msrb.mxu2 %v4112_v38 }
 0x5cb   : > { %2916 = vmatpush.bf16.msrb.mxu0 %v4087_v39  ;;  %2944 = vmatpush.bf16.msra.mxu1 %v4103_v40  ;;  %v4135_v40 = vld [vmem:[%s4451_s24 + $0x2b0] sm:$0xff] }
 0x5cc   : > { %2930 = vmatpush.bf16.msra.mxu3 %v4095_v41  ;;  %2958 = vmatpush.bf16.msrb.mxu2 %v4111_v43 }
 0x5cf   : > { %2917 = vmatpush.bf16.msrb.mxu0 %v4086_v44  ;;  %2945 = vmatpush.bf16.msra.mxu1 %v4102_v45  ;;  %v4128_v44 = vld [vmem:[%s4451_s24 + $0x278] sm:$0xff] }
 0x5d0   : > { %2931 = vmatpush.bf16.msra.mxu3 %v4094_v42  ;;  %2959 = vmatpush.bf16.msrb.mxu2 %v4110_v48  ;;  %v1370_v48 = vperm.slane %v4800_v3, 6 }
 0x5d3   : > { %2918 = vmatpush.bf16.msrb.mxu0 %v4085_v46  ;;  %2946 = vmatpush.bf16.msra.mxu1 %v4101_v47  ;;  %v1368_v46 = vperm.slane %v4800_v3, 4  ;;  %v4144_v47 = vld [vmem:[%s4451_s24 + $0x2f8] sm:$0xff] }
 0x5d4   : > { %2932 = vmatpush.bf16.msra.mxu3 %v4093_v51  ;;  %2960 = vmatpush.bf16.msrb.mxu2 %v4109_v52  ;;  %v4127_v52 = vld [vmem:[%s4451_s24 + $0x270] sm:$0xff] }
 0x5d7   : > { %2919 = vmatpush.bf16.msrb.mxu0 %v4084_v49  ;;  %2947 = vmatpush.bf16.msra.mxu1 %v4100_v50  ;;  %v4118_v49 = vld [vmem:[%s4451_s24 + $0x228] sm:$0xff] }
 0x5d8   : > { %2933 = vmatpush.bf16.msra.mxu3 %v4092_v55  ;;  %2961 = vmatpush.bf16.msrb.mxu2 %v4108_v56  ;;  %v4134_v50 = vld [vmem:[%s4451_s24 + $0x2a8] sm:$0xff]  ;;  %v4143_v55 = vld [vmem:[%s4451_s24 + $0x2f0] sm:$0xff] }
 0x5db   : > { %2920 = vmatpush.bf16.msrb.mxu0 %v4083_v53  ;;  %2948 = vmatpush.bf16.msra.mxu1 %v4099_v54 }
 0x5dc   : > { %2934 = vmatpush.bf16.msra.mxu3 %v4091_v58  ;;  %2962 = vmatpush.bf16.msrb.mxu2 %v4107_v59  ;;  %v1369_v58 = vperm.slane %v4800_v3, 5 }
 0x5df   : > { %2921 = vmatpush.bf16.msrb.mxu0 %v4082_v57  ;;  %2949 = vmatpush.bf16.msra.mxu1 %v4098_v12  ;;  %v4117_v12 = vld [vmem:[%s4451_s24 + $0x220] sm:$0xff] }
 0x5e0   : > { %2935 = vmatpush.bf16.msra.mxu3 %v4090_v63  ;;  %2963 = vmatpush.bf16.msrb.mxu2 %v4106_v0  ;;  %v1371_v63 = vperm.slane %v4800_v3, 7 }
 0x5e3   : > { %2922 = vmatpush.bf16.msrb.mxu0 %v4081_v61  ;;  %2950 = vmatpush.bf16.msra.mxu1 %v4097_v62  ;;  %v4133_v62 = vld [vmem:[%s4451_s24 + $0x2a0] sm:$0xff] }
 0x5e4   : > { %2936 = vmatpush.bf16.msra.mxu3 %v4089_v1  ;;  %2964 = vmatpush.bf16.msrb.mxu2 %v4105_v2  ;;  %v4126_v1 = vld [vmem:[%s4451_s24 + $0x268] sm:$0xff] }
 0x602   : > { %v1568_v4 = vpop.f32.mrf.mxu0 }
 0x603   : > { %v1596_v5 = vpop.f32.mrf.mxu1  ;;  %v1569_v13 = vadd.f32 %v1568_v4, %v1364_v8 }
 0x604   : > { %v1597_v15 = vadd.f32 %v1596_v5, %v1366_v9  ;;  %v4142_v5 = vld [vmem:[%s4451_s24 + $0x2e8] sm:$0xff] }
 0x605   : > { %v1783_v23 = vmax.f32 %v1569_v13, 0.0 }
 0x606   : > { %v1785_v25 = vmax.f32 %v1597_v15, 0.0  ;;  %v4132_v15 = vld [vmem:[%s4451_s24 + $0x298] sm:$0xff] }
 0x608   : > { %v1582_v11 = vpop.f32.mrf.mxu3 }
 0x609   : > { %v1610_v14 = vpop.f32.mrf.mxu2  ;;  %v1583_v28 = vadd.f32 %v1582_v11, %v1365_v7  ;;  %v4116_v11 = vld [vmem:[%s4451_s24 + $0x218] sm:$0xff] }
 0x60a   : > { %v1570_v16 = vpop.f32.mrf.mxu0  ;;  %v1611_v30 = vadd.f32 %v1610_v14, %v1367_v19 }
 0x60b   : > { %v1571_v17 = vadd.f32 %v1570_v16, %v1364_v8  ;;  %v1598_v18 = vpop.f32.mrf.mxu1  ;;  %v1784_v37 = vmax.f32 %v1583_v28, 0.0 }
 0x60c   : > { %v1599_v22 = vadd.f32 %v1598_v18, %v1366_v9  ;;  %v1786_v41 = vmax.f32 %v1611_v30, 0.0 }
 0x60d   : > { %v1799_v60 = vmax.f32 %v1571_v17, 0.0  ;;  %v4125_v17 = vld [vmem:[%s4451_s24 + $0x260] sm:$0xff] }
 0x60e   : > { %v1801_v26 = vmax.f32 %v1599_v22, 0.0  ;;  %v4141_v22 = vld [vmem:[%s4451_s24 + $0x2e0] sm:$0xff] }
 0x60f   : > { %v1815_v29 = vpack.c.bf16 %v1799_v60, %v1783_v23  ;;  %v4829_v60 = vld [vmem:[%s4445_s21 + $0x8] sm:$0xff] }
 0x610   : > { %v1817_v31 = vpack.c.bf16 %v1801_v26, %v1785_v25  ;;  %v1584_v32 = vpop.f32.mrf.mxu3  ;;  %v4115_v26 = vld [vmem:[%s4451_s24 + $0x210] sm:$0xff] }
 0x611   : > { %v1585_v33 = vadd.f32 %v1584_v32, %v1365_v7  ;;  %v1612_v34 = vpop.f32.mrf.mxu2  ;;  %2867 = vmatmul.bf16.vlgmr.msra.gmra.mxu0 %v1815_v29  ;;  %v4124_v32 = vld [vmem:[%s4451_s24 + $0x258] sm:$0xff] }
 0x612   : > { %v1613_v35 = vadd.f32 %v1612_v34, %v1367_v19  ;;  %2895 = vmatmul.bf16.vlgmr.msrb.gmra.mxu1 %v1817_v31  ;;  %2971 = vmatpush.bf16.msra.mxu0 %v4120_v27  ;;  %v1624_v10 = vpop.f32.mrf.mxu0  ;;  %v1372_v34 = vperm.slane %v4829_v60, 0 }
 0x613   : > { %v1800_v38 = vmax.f32 %v1585_v33, 0.0  ;;  %2999 = vmatpush.bf16.msrb.mxu1 %v4136_v24  ;;  %v1652_v39 = vpop.f32.mrf.mxu1  ;;  %v1625_v53 = vadd.f32 %v1624_v10, %v1368_v46  ;;  %v4131_v24 = vld [vmem:[%s4451_s24 + $0x290] sm:$0xff] }
 0x614   : > { %v1802_v43 = vmax.f32 %v1613_v35, 0.0  ;;  %v1653_v56 = vadd.f32 %v1652_v39, %v1370_v48  ;;  %v4140_v35 = vld [vmem:[%s4451_s24 + $0x2d8] sm:$0xff] }
 0x615   : > { %v1816_v45 = vpack.c.bf16 %v1800_v38, %v1784_v37  ;;  %v1787_v2 = vmax.f32 %v1625_v53, 0.0  ;;  %v4114_v37 = vld [vmem:[%s4451_s24 + $0x208] sm:$0xff] }
 0x616   : > { %v1818_v42 = vpack.c.bf16 %v1802_v43, %v1786_v41  ;;  %2972 = vmatpush.bf16.msra.mxu0 %v4119_v36  ;;  %v1789_v8 = vmax.f32 %v1653_v56, 0.0  ;;  %v1374_v36 = vperm.slane %v4829_v60, 2  ;;  %v4130_v38 = vld [vmem:[%s4451_s24 + $0x288] sm:$0xff] }
 0x617   : > { %3000 = vmatpush.bf16.msrb.mxu1 %v4135_v40  ;;  %2881 = vmatmul.bf16.vlgmr.msrb.gmra.mxu3 %v1816_v45  ;;  %v4123_v40 = vld [vmem:[%s4451_s24 + $0x250] sm:$0xff] }
 0x618   : > { %2909 = vmatmul.bf16.vlgmr.msra.gmra.mxu2 %v1818_v42  ;;  %2985 = vmatpush.bf16.msrb.mxu3 %v4128_v44  ;;  %v1638_v51 = vpop.f32.mrf.mxu3  ;;  %v4139_v44 = vld [vmem:[%s4451_s24 + $0x2d0] sm:$0xff]  ;;  %v1373_v42 = vperm.slane %v4829_v60, 1 }
 0x619   : > { %3013 = vmatpush.bf16.msra.mxu2 %v4144_v47  ;;  %v1666_v54 = vpop.f32.mrf.mxu2  ;;  %v1639_v13 = vadd.f32 %v1638_v51, %v1369_v58  ;;  %v4113_v47 = vld [vmem:[%s4451_s24 + $0x200] sm:$0xff]  ;;  %v4152_v51 = vld [vmem:[%s4451_s24 + $0x338] sm:$0xff] }
 0x61a   : > { %2973 = vmatpush.bf16.msra.mxu0 %v4118_v49  ;;  %v1626_v57 = vpop.f32.mrf.mxu0  ;;  %v1667_v3 = vadd.f32 %v1666_v54, %v1371_v63  ;;  %v4168_v54 = vld [vmem:[%s4451_s24 + $0x3b8] sm:$0xff] }
 0x61b   : > { %3001 = vmatpush.bf16.msrb.mxu1 %v4134_v50  ;;  %v1627_v59 = vadd.f32 %v1626_v57, %v1368_v46  ;;  %v1654_v61 = vpop.f32.mrf.mxu1  ;;  %v1788_v27 = vmax.f32 %v1639_v13, 0.0  ;;  %v4129_v50 = vld [vmem:[%s4451_s24 + $0x280] sm:$0xff]  ;;  %v4160_v13 = vld [vmem:[%s4451_s24 + $0x378] sm:$0xff] }
 0x61c   : > { %v1655_v0 = vadd.f32 %v1654_v61, %v1370_v48  ;;  %2986 = vmatpush.bf16.msrb.mxu3 %v4127_v52  ;;  %v1790_v30 = vmax.f32 %v1667_v3, 0.0  ;;  %v1375_v52 = vperm.slane %v4829_v60, 3 }
 0x61d   : > { %v1803_v4 = vmax.f32 %v1627_v59, 0.0  ;;  %3014 = vmatpush.bf16.msra.mxu2 %v4143_v55  ;;  %v4122_v55 = vld [vmem:[%s4451_s24 + $0x248] sm:$0xff] }
 0x61e   : > { %v1805_v9 = vmax.f32 %v1655_v0, 0.0  ;;  %2974 = vmatpush.bf16.msra.mxu0 %v4117_v12  ;;  %v4138_v12 = vld [vmem:[%s4451_s24 + $0x2c8] sm:$0xff] }
 0x61f   : > { %v1819_v14 = vpack.c.bf16 %v1803_v4, %v1787_v2  ;;  %3002 = vmatpush.bf16.msrb.mxu1 %v4133_v62  ;;  %v4167_v4 = vld [vmem:[%s4451_s24 + $0x3b0] sm:$0xff] }
 0x620   : > { %v1821_v16 = vpack.c.bf16 %v1805_v9, %v1789_v8  ;;  %2987 = vmatpush.bf16.msrb.mxu3 %v4126_v1  ;;  %v1640_v7 = vpop.f32.mrf.mxu3 }
 0x621   : > { %3015 = vmatpush.bf16.msra.mxu2 %v4142_v5  ;;  %v1641_v18 = vadd.f32 %v1640_v7, %v1369_v58  ;;  %v1668_v19 = vpop.f32.mrf.mxu2  ;;  %2923 = vmatmul.bf16.vlgmr.msrb.gmra.mxu0 %v1819_v14  ;;  %v4121_v5 = vld [vmem:[%s4451_s24 + $0x240] sm:$0xff]  ;;  %v4150_v7 = vld [vmem:[%s4451_s24 + $0x328] sm:$0xff] }
 0x622   : > { %v1669_v23 = vadd.f32 %v1668_v19, %v1371_v63  ;;  %2951 = vmatmul.bf16.vlgmr.msra.gmra.mxu1 %v1821_v16  ;;  %2975 = vmatpush.bf16.msra.mxu0 %v4116_v11  ;;  %v1680_v25 = vpop.f32.mrf.mxu0  ;;  %v4151_v63 = vld [vmem:[%s4451_s24 + $0x330] sm:$0xff]  ;;  %v4137_v11 = vld [vmem:[%s4451_s24 + $0x2c0] sm:$0xff]  ;;  %v4166_v19 = vld [vmem:[%s4451_s24 + $0x3a8] sm:$0xff] }
 0x623   : > { %v1804_v28 = vmax.f32 %v1641_v18, 0.0  ;;  %3003 = vmatpush.bf16.msrb.mxu1 %v4132_v15  ;;  %v1708_v29 = vpop.f32.mrf.mxu1  ;;  %v1681_v41 = vadd.f32 %v1680_v25, %v1372_v34  ;;  %v4176_v15 = vld [vmem:[%s4451_s24 + $0x3f8] sm:$0xff] }
 0x624   : > { %v1806_v31 = vmax.f32 %v1669_v23, 0.0  ;;  %2988 = vmatpush.bf16.msrb.mxu3 %v4125_v17  ;;  %v1709_v45 = vadd.f32 %v1708_v29, %v1374_v36  ;;  %v4159_v23 = vld [vmem:[%s4451_s24 + $0x370] sm:$0xff] }
 0x625   : > { %v1820_v33 = vpack.c.bf16 %v1804_v28, %v1788_v27  ;;  %3016 = vmatpush.bf16.msra.mxu2 %v4141_v22  ;;  %v1791_v56 = vmax.f32 %v1681_v41, 0.0  ;;  %v4149_v28 = vld [vmem:[%s4451_s24 + $0x320] sm:$0xff]  ;;  %v1376_v41 = vperm.slane %v4829_v60, 4 }
 0x626   : > { %v1822_v10 = vpack.c.bf16 %v1806_v31, %v1790_v30  ;;  %2976 = vmatpush.bf16.msra.mxu0 %v4115_v26  ;;  %v1793_v58 = vmax.f32 %v1709_v45, 0.0  ;;  %v4175_v26 = vld [vmem:[%s4451_s24 + $0x3f0] sm:$0xff]  ;;  %v4158_v30 = vld [vmem:[%s4451_s24 + $0x368] sm:$0xff]  ;;  %v1378_v45 = vperm.slane %v4829_v60, 6 }
 0x627   : > { %3004 = vmatpush.bf16.msrb.mxu1 %v4131_v24  ;;  %2937 = vmatmul.bf16.vlgmr.msra.gmra.mxu3 %v1820_v33  ;;  %v4165_v24 = vld [vmem:[%s4451_s24 + $0x3a0] sm:$0xff]  ;;  %v4174_v31 = vld [vmem:[%s4451_s24 + $0x3e8] sm:$0xff]  ;;  %v4164_v33 = vld [vmem:[%s4451_s24 + $0x398] sm:$0xff] }
 0x628   : > { %2965 = vmatmul.bf16.vlgmr.msrb.gmra.mxu2 %v1822_v10  ;;  %2989 = vmatpush.bf16.msrb.mxu3 %v4124_v32  ;;  %v1694_v39 = vpop.f32.mrf.mxu3  ;;  %v4148_v32 = vld [vmem:[%s4451_s24 + $0x318] sm:$0xff] }
 0x629   : > { %3017 = vmatpush.bf16.msra.mxu2 %v4140_v35  ;;  %v1722_v43 = vpop.f32.mrf.mxu2  ;;  %v1695_v61 = vadd.f32 %v1694_v39, %v1373_v42  ;;  %v4157_v35 = vld [vmem:[%s4451_s24 + $0x360] sm:$0xff] }
 0x62a   : > { %2977 = vmatpush.bf16.msra.mxu0 %v4114_v37  ;;  %v1682_v46 = vpop.f32.mrf.mxu0  ;;  %v1723_v0 = vadd.f32 %v1722_v43, %v1375_v52  ;;  %v4147_v37 = vld [vmem:[%s4451_s24 + $0x310] sm:$0xff] }
 0x62b   : > { %3005 = vmatpush.bf16.msrb.mxu1 %v4130_v38  ;;  %v1683_v48 = vadd.f32 %v1682_v46, %v1372_v34  ;;  %v1710_v49 = vpop.f32.mrf.mxu1  ;;  %v1792_v3 = vmax.f32 %v1695_v61, 0.0  ;;  %v4163_v38 = vld [vmem:[%s4451_s24 + $0x390] sm:$0xff]  ;;  %v4146_v46 = vld [vmem:[%s4451_s24 + $0x308] sm:$0xff] }
 0x62c   : > { %v1711_v53 = vadd.f32 %v1710_v49, %v1374_v36  ;;  %2990 = vmatpush.bf16.msrb.mxu3 %v4123_v40  ;;  %v1794_v17 = vmax.f32 %v1723_v0, 0.0  ;;  %v4173_v36 = vld [vmem:[%s4451_s24 + $0x3e0] sm:$0xff]  ;;  %v4156_v40 = vld [vmem:[%s4451_s24 + $0x358] sm:$0xff]  ;;  %v4155_v49 = vld [vmem:[%s4451_s24 + $0x350] sm:$0xff] }
 0x62d   : > { %v1807_v57 = vmax.f32 %v1683_v48, 0.0  ;;  %3018 = vmatpush.bf16.msra.mxu2 %v4139_v44  ;;  %v4172_v44 = vld [vmem:[%s4451_s24 + $0x3d8] sm:$0xff]  ;;  %v4154_v61 = vld [vmem:[%s4451_s24 + $0x348] sm:$0xff] }
 0x62e   : > { %v1809_v59 = vmax.f32 %v1711_v53, 0.0  ;;  %2978 = vmatpush.bf16.msra.mxu0 %v4113_v47  ;;  %v4170_v0 = vld [vmem:[%s4451_s24 + $0x3c8] sm:$0xff] }
 0x62f   : > { %v1823_v62 = vpack.c.bf16 %v1807_v57, %v1791_v56  ;;  %3006 = vmatpush.bf16.msrb.mxu1 %v4129_v50 }
 0x630   : > { %v1825_v1 = vpack.c.bf16 %v1809_v59, %v1793_v58  ;;  %2991 = vmatpush.bf16.msrb.mxu3 %v4122_v55  ;;  %v1696_v2 = vpop.f32.mrf.mxu3  ;;  %v1377_v55 = vperm.slane %v4829_v60, 5  ;;  %v1379_v58 = vperm.slane %v4829_v60, 7 }
 0x631   : > { %3019 = vmatpush.bf16.msra.mxu2 %v4138_v12  ;;  %v1697_v8 = vadd.f32 %v1696_v2, %v1373_v42  ;;  %v1724_v9 = vpop.f32.mrf.mxu2  ;;  %2979 = vmatmul.bf16.vlgmr.msra.gmra.mxu0 %v1823_v62  ;;  %v4162_v42 = vld [vmem:[%s4451_s24 + $0x388] sm:$0xff]  ;;  %v4161_v12 = vld [vmem:[%s4451_s24 + $0x380] sm:$0xff] }
 0x632   : > { %3027 = vmatpush.bf16.msrb.mxu0 %v4152_v51  ;;  %v1725_v14 = vadd.f32 %v1724_v9, %v1375_v52  ;;  %3007 = vmatmul.bf16.vlgmr.msrb.gmra.mxu1 %v1825_v1  ;;  %v1736_v27 = vpop.f32.mrf.mxu0  ;;  %v4171_v51 = vld [vmem:[%s4451_s24 + $0x3d0] sm:$0xff] }
 0x633   : > { %3055 = vmatpush.bf16.msra.mxu1 %v4168_v54  ;;  %v1808_v16 = vmax.f32 %v1697_v8, 0.0  ;;  %v1764_v29 = vpop.f32.mrf.mxu1  ;;  %v1737_v50 = vadd.f32 %v1736_v27, %v1376_v41  ;;  %v4145_v54 = vld [vmem:[%s4451_s24 + $0x300] sm:$0xff] }
 0x634   : > { %v1810_v18 = vmax.f32 %v1725_v14, 0.0  ;;  %2992 = vmatpush.bf16.msrb.mxu3 %v4121_v5  ;;  %v1765_v52 = vadd.f32 %v1764_v29, %v1378_v45 }
 0x635   : > { %v1824_v22 = vpack.c.bf16 %v1808_v16, %v1792_v3  ;;  %3020 = vmatpush.bf16.msra.mxu2 %v4137_v11  ;;  %v1795_v62 = vmax.f32 %v1737_v50, 0.0  ;;  %v4153_v11 = vld [vmem:[%s4451_s24 + $0x340] sm:$0xff] }
 0x636   : > { %3028 = vmatpush.bf16.msrb.mxu0 %v4151_v63  ;;  %v1826_v25 = vpack.c.bf16 %v1810_v18, %v1794_v17  ;;  %v1797_v1 = vmax.f32 %v1765_v52, 0.0 }
 0x637   : > { %3056 = vmatpush.bf16.msra.mxu1 %v4167_v4  ;;  %2993 = vmatmul.bf16.vlgmr.msrb.gmra.mxu3 %v1824_v22 }
 0x638   : > { %3041 = vmatpush.bf16.msra.mxu3 %v4160_v13  ;;  %3021 = vmatmul.bf16.vlgmr.msra.gmra.mxu2 %v1826_v25  ;;  %v1750_v34 = vpop.f32.mrf.mxu3  ;;  %v4169_v13 = vld [vmem:[%s4451_s24 + $0x3c0] sm:$0xff] }
 0x639   : > { %3069 = vmatpush.bf16.msrb.mxu2 %v4176_v15  ;;  %v1778_v10 = vpop.f32.mrf.mxu2  ;;  %v1751_v4 = vadd.f32 %v1750_v34, %v1377_v55 }
 0x63a   : > { %3029 = vmatpush.bf16.msrb.mxu0 %v4150_v7  ;;  %v1738_v39 = vpop.f32.mrf.mxu0  ;;  %v1779_v8 = vadd.f32 %v1778_v10, %v1379_v58 }
 0x63b   : > { %3057 = vmatpush.bf16.msra.mxu1 %v4166_v19  ;;  %v1766_v43 = vpop.f32.mrf.mxu1  ;;  %v1739_v47 = vadd.f32 %v1738_v39, %v1376_v41  ;;  %v1796_v15 = vmax.f32 %v1751_v4, 0.0 }
 0x63c   : > { %3042 = vmatpush.bf16.msra.mxu3 %v4159_v23  ;;  %v1767_v48 = vadd.f32 %v1766_v43, %v1378_v45  ;;  %v1798_v3 = vmax.f32 %v1779_v8, 0.0 }
 0x63d   : > { %3070 = vmatpush.bf16.msrb.mxu2 %v4175_v26  ;;  %v1811_v56 = vmax.f32 %v1739_v47, 0.0 }
 0x63e   : > { %3030 = vmatpush.bf16.msrb.mxu0 %v4149_v28  ;;  %v1813_v59 = vmax.f32 %v1767_v48, 0.0  ;;  %v4223_v28 = vld [vmem:[%s595_s30] ss:$0 sm:$0xff] }
 0x63f   : > { %3058 = vmatpush.bf16.msra.mxu1 %v4165_v24  ;;  %v1827_v5 = vpack.c.bf16 %v1811_v56, %v1795_v62 }
 0x640   : > { %3043 = vmatpush.bf16.msra.mxu3 %v4158_v30  ;;  %v1752_v53 = vpop.f32.mrf.mxu3  ;;  %v1829_v9 = vpack.c.bf16 %v1813_v59, %v1797_v1 }
 0x641   : > { %3071 = vmatpush.bf16.msrb.mxu2 %v4174_v31  ;;  %v1780_v57 = vpop.f32.mrf.mxu2  ;;  %v1753_v63 = vadd.f32 %v1752_v53, %v1377_v55 }
 0x642   : > { %3031 = vmatpush.bf16.msrb.mxu0 %v4148_v32  ;;  %v1781_v2 = vadd.f32 %v1780_v57, %v1379_v58 }
 0x643   : > { %3059 = vmatpush.bf16.msra.mxu1 %v4164_v33  ;;  %v1812_v60 = vmax.f32 %v1753_v63, 0.0 }
 0x644   : > { %3044 = vmatpush.bf16.msra.mxu3 %v4157_v35  ;;  %v1814_v14 = vmax.f32 %v1781_v2, 0.0 }
 0x645   : > { %3072 = vmatpush.bf16.msrb.mxu2 %v4173_v36  ;;  %v1828_v16 = vpack.c.bf16 %v1812_v60, %v1796_v15 }
 0x646   : > { %3032 = vmatpush.bf16.msrb.mxu0 %v4147_v37  ;;  %v1830_v7 = vpack.c.bf16 %v1814_v14, %v1798_v3 }
 0x647   : > { %3060 = vmatpush.bf16.msra.mxu1 %v4163_v38 }
 0x648   : > { %3045 = vmatpush.bf16.msra.mxu3 %v4156_v40 }
 0x649   : > { %3073 = vmatpush.bf16.msrb.mxu2 %v4172_v44 }
 0x64a   : > { %3033 = vmatpush.bf16.msrb.mxu0 %v4146_v46 }
 0x64b   : > { %3061 = vmatpush.bf16.msra.mxu1 %v4162_v42 }
 0x64c   : > { %3046 = vmatpush.bf16.msra.mxu3 %v4155_v49 }
 0x64d   : > { %3074 = vmatpush.bf16.msrb.mxu2 %v4171_v51 }
 0x64e   : > { %3034 = vmatpush.bf16.msrb.mxu0 %v4145_v54 }
 0x64f   : > { %3062 = vmatpush.bf16.msra.mxu1 %v4161_v12 }
 0x650   : > { %3047 = vmatpush.bf16.msra.mxu3 %v4154_v61 }
 0x651   : > { %3075 = vmatpush.bf16.msrb.mxu2 %v4170_v0  ;;  %3035 = vmatmul.bf16.vlgmr.msrb.gmra.mxu0 %v1827_v5 }
 0x652   : > { %3063 = vmatmul.bf16.vlgmr.msra.gmra.mxu1 %v1829_v9 }
 0x654   : > { %3048 = vmatpush.bf16.msra.mxu3 %v4153_v11 }
 0x655   : > { %3076 = vmatpush.bf16.msrb.mxu2 %v4169_v13 }
 0x657   : > { %3049 = vmatmul.bf16.vlgmr.msra.gmra.mxu3 %v1828_v16 }
 0x658   : > { %3077 = vmatmul.bf16.vlgmr.msrb.gmra.mxu2 %v1830_v7 }
 0x68e   : > { %v2868_v17 = vpop.f32.mrf.mxu0 }
 0x68f   : > { %v2896_v18 = vpop.f32.mrf.mxu1  ;;  %v2869_v24 = vadd.f32 %v4223_v28, %v2868_v17 }
 0x696   : > { %v2870_v23 = vpop.f32.mrf.mxu0 }
 0x697   : > { %v2898_v25 = vpop.f32.mrf.mxu1  ;;  %v2871_v10 = vadd.f32 %v4223_v28, %v2870_v23 }
 0x69a   : > { %v2882_v19 = vpop.f32.mrf.mxu3 }
 0x69b   : > { %v2910_v22 = vpop.f32.mrf.mxu2  ;;  %v2883_v30 = vadd.f32 %v2882_v19, %v2869_v24 }
 0x69d   : > { %v2897_v34 = vadd.f32 %v2896_v18, %v2883_v30 }
 0x69e   : > { %v2924_v29 = vpop.f32.mrf.mxu0 }
 0x69f   : > { %v2952_v31 = vpop.f32.mrf.mxu1  ;;  %v2911_v36 = vadd.f32 %v2910_v22, %v2897_v34 }
 0x6a1   : > { %v2925_v40 = vadd.f32 %v2924_v29, %v2911_v36 }
 0x6a2   : > { %v2884_v26 = vpop.f32.mrf.mxu3 }
 0x6a3   : > { %v2912_v27 = vpop.f32.mrf.mxu2  ;;  %v2885_v37 = vadd.f32 %v2884_v26, %v2871_v10 }
 0x6a5   : > { %v2899_v41 = vadd.f32 %v2898_v25, %v2885_v37 }
 0x6a6   : > { %v2926_v35 = vpop.f32.mrf.mxu0 }
 0x6a7   : > { %v2954_v38 = vpop.f32.mrf.mxu1  ;;  %v2913_v46 = vadd.f32 %v2912_v27, %v2899_v41 }
 0x6a9   : > { %v2927_v42 = vadd.f32 %v2926_v35, %v2913_v46 }
 0x6aa   : > { %v2938_v32 = vpop.f32.mrf.mxu3 }
 0x6ab   : > { %v2966_v33 = vpop.f32.mrf.mxu2  ;;  %v2939_v44 = vadd.f32 %v2938_v32, %v2925_v40 }
 0x6ad   : > { %v2953_v47 = vadd.f32 %v2952_v31, %v2939_v44 }
 0x6ae   : > { %v2980_v45 = vpop.f32.mrf.mxu0 }
 0x6af   : > { %v3008_v48 = vpop.f32.mrf.mxu1  ;;  %v2967_v50 = vadd.f32 %v2966_v33, %v2953_v47 }
 0x6b1   : > { %v2981_v54 = vadd.f32 %v2980_v45, %v2967_v50  ;;  %v4225_v50 = vld [vmem:[%s601_s18] ss:$0 sm:$0xff] }
 0x6b2   : > { %v2940_v39 = vpop.f32.mrf.mxu3 }
 0x6b3   : > { %v2968_v43 = vpop.f32.mrf.mxu2  ;;  %v2941_v51 = vadd.f32 %v2940_v39, %v2927_v42 }
 0x6b5   : > { %v2955_v55 = vadd.f32 %v2954_v38, %v2941_v51 }
 0x6b6   : > { %v2982_v53 = vpop.f32.mrf.mxu0 }
 0x6b7   : > { %v2969_v57 = vadd.f32 %v2968_v43, %v2955_v55  ;;  %v3010_v12 = vpop.f32.mrf.mxu1 }
 0x6b9   : > { %v2983_v63 = vadd.f32 %v2982_v53, %v2969_v57 }
 0x6ba   : > { %v2994_v49 = vpop.f32.mrf.mxu3 }
 0x6bb   : > { %v3022_v52 = vpop.f32.mrf.mxu2  ;;  %v2995_v56 = vadd.f32 %v2994_v49, %v2981_v54 }
 0x6bd   : > { %v3009_v59 = vadd.f32 %v3008_v48, %v2995_v56  ;;  %v4224_v48 = vld [vmem:[%s598_s14] ss:$0 sm:$0xff] }
 0x6bf   : > { %v3023_v0 = vadd.f32 %v3022_v52, %v3009_v59 }
 0x6c2   : > { %v2996_v58 = vpop.f32.mrf.mxu3 }
 0x6c3   : > { %v3024_v61 = vpop.f32.mrf.mxu2  ;;  %v2997_v1 = vadd.f32 %v2996_v58, %v2983_v63 }
 0x6c5   : > { %v3011_v8 = vadd.f32 %v3010_v12, %v2997_v1 }
 0x6c7   : > { %v3025_v14 = vadd.f32 %v3024_v61, %v3011_v8 }
 0x6ce   : > { %v3036_v62 = vpop.f32.mrf.mxu0 }
 0x6cf   : > { %v3037_v2 = vadd.f32 %v3036_v62, %v3023_v0  ;;  %v3064_v4 = vpop.f32.mrf.mxu1 }
 0x6d6   : > { %v3038_v13 = vpop.f32.mrf.mxu0 }
 0x6d7   : > { %v3039_v3 = vadd.f32 %v3038_v13, %v3025_v14  ;;  %v3066_v19 = vpop.f32.mrf.mxu1 }
 0x6da   : > { %v3050_v5 = vpop.f32.mrf.mxu3 }
 0x6db   : > { %v3051_v9 = vadd.f32 %v3050_v5, %v3037_v2  ;;  %v3078_v11 = vpop.f32.mrf.mxu2 }
 0x6dd   : > { %v3065_v60 = vadd.f32 %v3064_v4, %v3051_v9 }
 0x6df   : > { %v3079_v15 = vadd.f32 %v3078_v11, %v3065_v60 }
 0x6e1   : > { %v3083_v16 = vadd.f32 %v3079_v15, %v4668_v20 }
 0x6e2   : > { %v3052_v7 = vpop.f32.mrf.mxu3 }
 0x6e3   : > { %v3053_v17 = vadd.f32 %v3052_v7, %v3039_v3  ;;  %v3085_v18 = vsel %vm622_vm1, %v3083_v16, 0.0  ;;  %v3080_v23 = vpop.f32.mrf.mxu2 }
 0x6e4   : > { %3086 = vadd.xlane.f32.xlu2 %v3085_v18 }
 0x6e5   : > { %v3067_v22 = vadd.f32 %v3066_v19, %v3053_v17 }
 0x6e7   : > { %v3081_v25 = vadd.f32 %v3080_v23, %v3067_v22 }
 0x6e9   : > { %v3084_v26 = vadd.f32 %v3081_v25, %v4670_v21 }
 0x6eb   : > { %v3088_v27 = vsel %vm622_vm1, %v3084_v26, 0.0 }
 0x6ec   : > { %3089 = vadd.xlane.f32.xlu2 %v3088_v27 }
 0x757   : > { %v3087_v28 = vpop.xlane.xlu2 %3086 }
 0x758   : > { %v3091_v29 = vmul.f32 %v3087_v28, %v4598_v6 }
 0x75a   : > { %v3093_v24 = vsub.f32 %v3083_v16, %v3091_v29 }
 0x75c   : > { %v3095_v30 = vmul.f32 %v3093_v24, %v3093_v24 }
 0x75e   : > { %v3097_v20 = vsel %vm622_vm1, %v3095_v30, 0.0 }
 0x75f   : > { %3098 = vadd.xlane.f32.xlu2 %v3097_v20  ;;  %v3090_v31 = vpop.xlane.xlu2 %3089 }
 0x760   : > { %v3092_v32 = vmul.f32 %v3090_v31, %v4598_v6 }
 0x762   : > { %v3094_v33 = vsub.f32 %v3084_v26, %v3092_v32 }
 0x764   : > { %v3096_v34 = vmul.f32 %v3094_v33, %v3094_v33 }
 0x766   : > { %v3100_v35 = vsel %vm622_vm1, %v3096_v34, 0.0 }
 0x767   : > { %3101 = vadd.xlane.f32.xlu2 %v3100_v35 }
 0x7d2   : > { %v3099_v21 = vpop.xlane.xlu2 %3098 }
 0x7d3   : > { %v3103_v10 = vmul.f32 %v3099_v21, %v4598_v6 }
 0x7d5   : > { %v3105_v36 = vadd.f32 1e-05, %v3103_v10 }
 0x7d7   : > { %4264 = vrsqrt.f32 %v3105_v36  ;;  %vm3113_vm14 = vweird.f32 %v3105_v36 }
 0x7da   : > { %v3102_v37 = vpop.xlane.xlu2 %3101 }
 0x7db   : > { %v3104_v38 = vmul.f32 %v3102_v37, %v4598_v6 }
 0x7dd   : > { %v4265_v39 = vpop.eup %4264  ;;  %v3106_v40 = vadd.f32 1e-05, %v3104_v38 }
 0x7de   : > { %v3108_v41 = vmul.f32 %v4265_v39, %v3105_v36  ;;  %vm3114_vm13 = vweird.f32 %v4265_v39 }
 0x7df   : > { %4266 = vrsqrt.f32 %v3106_v40  ;;  %vm3115_vm15 = vmor %vm3113_vm14, %vm3114_vm13  ;;  %vm3123_vm2 = vweird.f32 %v3106_v40 }
 0x7e0   : > { %v3109_v43 = vmul.f32 %v4265_v39, %v3108_v41 }
 0x7e2   : > { %v3110_v44 = vmul.f32 0.5, %v3109_v43 }
 0x7e4   : > { %v3111_v45 = vsub.f32 1.5, %v3110_v44 }
 0x7e5   : > { %v4267_v46 = vpop.eup %4266 }
 0x7e6   : > { %v3112_v47 = vmul.f32 %v4265_v39, %v3111_v45  ;;  %v3118_v42 = vmul.f32 %v4267_v46, %v3106_v40  ;;  %vm3124_vm0 = vweird.f32 %v4267_v46 }
 0x7e7   : > { %vm3125_vm3 = vmor %vm3123_vm2, %vm3124_vm0 }
 0x7e8   : > { %v3116_v6 = vsel %vm3115_vm15, %v4265_v39, %v3112_v47  ;;  %v3119_v49 = vmul.f32 %v4267_v46, %v3118_v42 }
 0x7e9   : > { %v3127_v51 = vmul.f32 %v3116_v6, %v3093_v24 }
 0x7ea   : > { %v3120_v52 = vmul.f32 0.5, %v3119_v49 }
 0x7eb   : > { %v3133_v53 = vmul.f32 %v4224_v48, %v3127_v51 }
 0x7ec   : > { %v3121_v54 = vsub.f32 1.5, %v3120_v52 }
 0x7ed   : > { %v3139_v55 = vadd.f32 %v4225_v50, %v3133_v53 }
 0x7ee   : > { %v3122_v56 = vmul.f32 %v4267_v46, %v3121_v54 }
 0x7ef   : > { %3141 = vst.msk [vmem:[#allocation2] sm:$0xff] %vm622_vm1, %v3139_v55 }
 0x7f0   : > { %v3126_v57 = vsel %vm3125_vm3, %v4267_v46, %v3122_v56 }
 0x7f1   : > { %v3128_v12 = vmul.f32 %v3126_v57, %v3094_v33 }
 0x7f3   : > { %v3134_v58 = vmul.f32 %v4224_v48, %v3128_v12  ;;  %3146 = sbr.rel (%p4008_p5) target bundleno = 2042 (0x7fa), region = 80 }
 0x7f5   : > { %v3140_v59 = vadd.f32 %v4225_v50, %v3134_v58 }
 0x7f7   : > { %3142 = vst.msk [vmem:[#allocation2 + $0x8] sm:$0xff] %vm622_vm1, %v3140_v59 }
 0x7f8   : > { %3147 = vst.msk [vmem:[#allocation3] sm:$0xff] %vm622_vm1, %v3139_v55 }
 0x7f9   : > { %3148 = vst.msk [vmem:[#allocation3 + $0x8] sm:$0xff] %vm622_vm1, %v3140_v59 }
 0x7fa PF: > { %p4181_p6 = scmp.eq.s32.totalorder %s4402_s26, 1  ;;  %s4324_s27 = smov [#allocation3]  }
 0x7fb   : > { %s3154_s14 = sshll.u32 %s4324_s27, 4  ;;  %s4951_s16 = sld [smem:[#allocation10_spill]]  ;;  %s3155_s14 = int_to_ptr.vmem [resolvable:$true] %s3154_s14 }
 0x7fc   : > { %s4325_s19 = smov 128  }
 0x801   : > { %s3156_s28 = sshll.u32 %s4951_s16, 4  ;;  %s3157_s28 = int_to_ptr.hbm [resolvable:$true] %s3156_s28 }
 0x802   : > { %4178 = dma.vmem_to_hbm [thread:$0]  (%p4181_p6), %s3155_s14, 256, %s3157_s28, [#allocation4], %s4325_s19, %s4325_s19, %s4320_s17  }
 0x803   : > { %4301 = dma.done.wait (%p4181_p6), [#allocation4], 256  }
 0x804   : > { %4303 = vsyncadd (%p4181_p6), [#allocation4], 4294967040 }
 0x805 PF: > { %s4952_s22 = sld [smem:[#allocation6_spill]] }
 0x80b   : > { %s24_s25 = sadd.s32 1, %s4952_s22  }
 0x80c   : > { %p21_p7 = scmp.ge.s32.totalorder %s24_s25, 4  }
 0x80e   :  { %23 = sbr.rel (!%p21_p7) target bundleno = 6 (0x6), region = 140 }
 0x813   :  { %3173 = vsyncpa [#allocation4], 1 }
 0x814   :  { %3175 = vsyncpa [#allocation4 + $0x1], 1 }

</bundles_post_ra>
